<compile_context>
chip_gen: v7x
topology: tpu7x:2x2x1
jax: 0.10.0
libtpu: 0.0.40
codegen_flags: <defaults>
</compile_context>

<pallas_src>
import functools

import jax
import jax.numpy as jnp
from jax.experimental import pallas as pl
from jax.experimental.pallas import tpu as pltpu


def _round_up(x, m):
    return (x + m - 1) // m * m


def _pick_batch_block(batch, seq, target=32):
    """Largest divisor of `batch` <= target that keeps >= 2 grid steps (feeds
    both v7x TensorCores) and multiple-of-8 sublane blocks."""
    best = None
    for tb in range(1, batch + 1):
        if batch % tb:
            continue
        if tb > target or batch // tb < 2:
            continue
        if tb % 8 or (tb * seq) % 8:
            continue
        best = tb
    return best if best is not None else batch


# ----------------------------------------------------------------------------
# Fused kernel: im2col conv (all taps, all banks, one matmul) + bias + ReLU +
# time max-pool + 2-layer FC head.
# ----------------------------------------------------------------------------
def _fused_kernel(x_ref, wcat_ref, bconv_ref, lout_ref,
                  w1_ref, b1_ref, w2_ref, b2_ref, o_ref, *, tb, seq):
    npad = wcat_ref.shape[-1]

    # Conv1d over every filter bank and tap: ONE flat bf16 MXU matmul with
    # K = fs_max*E.  Tap alignment was folded into x_ref by the wrapper-side
    # im2col, so the MXU sees layout-clean, lane-dense operands.
    y = jnp.dot(x_ref[...], wcat_ref[...],
                preferred_element_type=jnp.float32)          # [tb*S, NPAD] f32
    y = y.reshape(tb, seq, npad)

    # Bias + ReLU + validity mask in a single pass.  lout[c] = S - fs + 1 for
    # the bank owning column c (0 for pad columns); rows with t >= lout —
    # including windows that ran off the end of the sequence — are forced to 0
    # and can never win the max-pool (valid post-ReLU values are >= 0).
    t_idx = jax.lax.broadcasted_iota(jnp.int32, (1, seq, npad), 1)
    valid = t_idx < lout_ref[...]                            # [1, S, NPAD]
    y = jnp.where(valid, jnp.maximum(y + bconv_ref[...], 0.0), 0.0)
    pooled = jnp.max(y, axis=1)                              # [tb, NPAD] f32

    # Classifier head epilogue (Dropout = identity at inference).
    h = jnp.dot(pooled.astype(jnp.bfloat16), w1_ref[...],
                preferred_element_type=jnp.float32) + b1_ref[...]
    h = jnp.maximum(h, 0.0)
    o_ref[...] = jnp.dot(h.astype(jnp.bfloat16), w2_ref[...],
                         preferred_element_type=jnp.float32) + b2_ref[...]


# ----------------------------------------------------------------------------
# Weight packing: one lane-dense bf16 im2col conv slab + per-column l_out
# vector + FC slabs (all padded to multiples of 128 lanes).
# ----------------------------------------------------------------------------
def pack_params(params, *, filter_sizes, filter_channels, seq_len,
                fc_hidden, num_labels):
    C = filter_channels
    nf = len(filter_sizes)
    fs_max = max(filter_sizes)
    E = params["embedding"].shape[1]
    feat = nf * C
    npad = _round_up(feat, 128)
    hpad = _round_up(fc_hidden, 128)
    lpad = _round_up(num_labels, 128)
    kc = fs_max * E                       # im2col K (>= 128 for real configs)

    wcat = jnp.zeros((kc, npad), jnp.float32)     # row k*E+e, col f*C+c
    bconv = jnp.zeros((1, 1, npad), jnp.float32)
    lout = jnp.zeros((1, 1, npad), jnp.int32)     # valid time length per col
    for f, (fs, w, b) in enumerate(
            zip(filter_sizes, params["conv_ws"], params["conv_bs"])):
        for k in range(fs):
            wcat = wcat.at[k * E:(k + 1) * E, f * C:(f + 1) * C].set(w[k])
        bconv = bconv.at[0, 0, f * C:(f + 1) * C].set(b)
        lout = lout.at[0, 0, f * C:(f + 1) * C].set(seq_len - fs + 1)

    w1 = jnp.zeros((npad, hpad), jnp.float32)
    w1 = w1.at[:feat, :fc_hidden].set(params["fc1_w"])
    b1 = jnp.zeros((1, hpad), jnp.float32).at[0, :fc_hidden].set(params["fc1_b"])
    w2 = jnp.zeros((hpad, lpad), jnp.float32)
    w2 = w2.at[:fc_hidden, :num_labels].set(params["fc2_w"])
    b2 = jnp.zeros((1, lpad), jnp.float32).at[0, :num_labels].set(params["fc2_b"])

    return {
        "wcat": wcat.astype(jnp.bfloat16),
        "bconv": bconv,
        "lout": lout,
        "w1": w1.astype(jnp.bfloat16),
        "b1": b1,
        "w2": w2.astype(jnp.bfloat16),
        "b2": b2,
        "fs_max": fs_max,
        "kc": kc,
        "npad": npad,
        "hpad": hpad,
        "lpad": lpad,
    }


# ----------------------------------------------------------------------------
# Forward
# ----------------------------------------------------------------------------
def hybrid_classifier_forward(params, packed, input_ids, *, num_labels,
                              batch_block=None):
    B, S = input_ids.shape
    E = params["embedding"].shape[1]
    fs_max = packed["fs_max"]
    kc, npad, hpad, lpad = (packed["kc"], packed["npad"], packed["hpad"],
                            packed["lpad"])
    assert kc == fs_max * E

    tb = _pick_batch_block(B, S) if batch_block is None else batch_block
    assert B % tb == 0
    rows = tb * S
    assert (rows % 8 == 0 and tb % 8 == 0) or tb == B

    # Embedding gather + im2col (tap concat along the feature axis) in XLA.
    # TODO(synk): fuse the gather into the kernel to drop this HBM round trip.
    emb = jnp.take(params["embedding"], input_ids, axis=0).astype(jnp.bfloat16)
    shifted = [emb] + [
        jnp.pad(emb[:, k:, :], ((0, 0), (0, k), (0, 0)))
        for k in range(1, fs_max)
    ]
    xcat = jnp.concatenate(shifted, axis=-1).reshape(B * S, kc)   # [B*S, KC] bf16

    # Advisory cost estimate so XLA schedules the surrounding ops sensibly.
    conv_flops = 2 * B * S * kc * npad
    fc_flops = 2 * B * npad * hpad + 2 * B * hpad * lpad
    weight_bytes = sum(
        int(packed[k].size) * packed[k].dtype.itemsize
        for k in ("wcat", "bconv", "lout", "w1", "b1", "w2", "b2"))
    cost = pl.CostEstimate(
        flops=conv_flops + fc_flops, transcendentals=0,
        bytes_accessed=int(xcat.size) * xcat.dtype.itemsize
        + weight_bytes + B * lpad * 4)

    def run(single_buffer_weights):
        def const_spec(shape):
            nz = tuple(0 for _ in shape)
            kwargs = {}
            if single_buffer_weights and hasattr(pl, "Buffered"):
                # Constant index_map -> one resident VMEM copy is enough.
                kwargs["pipeline_mode"] = pl.Buffered(1)
            return pl.BlockSpec(shape, lambda i, _nz=nz: _nz, **kwargs)

        return pl.pallas_call(
            functools.partial(_fused_kernel, tb=tb, seq=S),
            out_shape=jax.ShapeDtypeStruct((B, lpad), jnp.float32),
            grid=(B // tb,),
            in_specs=[
                pl.BlockSpec((rows, kc), lambda i: (i, 0)),    # im2col acts
                const_spec((kc, npad)),                        # conv weights
                const_spec((1, 1, npad)),                      # conv bias
                const_spec((1, 1, npad)),                      # per-col l_out
                const_spec((npad, hpad)),                      # fc1 w
                const_spec((1, hpad)),                         # fc1 b
                const_spec((hpad, lpad)),                      # fc2 w
                const_spec((1, lpad)),                         # fc2 b
            ],
            out_specs=pl.BlockSpec((tb, lpad), lambda i: (i, 0)),
            compiler_params=pltpu.CompilerParams(
                dimension_semantics=("parallel",)),
            cost_estimate=cost,
        )(xcat, packed["wcat"], packed["bconv"], packed["lout"],
          packed["w1"], packed["b1"], packed["w2"], packed["b2"])

    try:
        out = run(True)
    except Exception:
        # Older jax without single-buffer pipeline_mode support: fall back to
        # default double-buffered constant blocks (correctness identical).
        out = run(False)

    return out[:, :num_labels]


# ----------------------------------------------------------------------------
# Pure-JAX f32 reference (same forward semantics), for validation.
# ----------------------------------------------------------------------------
def reference_forward(params, input_ids):
    embedded = jnp.take(params["embedding"], input_ids, axis=0)      # [B, S, E]
    x_ncw = jnp.transpose(embedded, (0, 2, 1))                       # [B, E, S]
    feats = []
    for w, b in zip(params["conv_ws"], params["conv_bs"]):
        w_pt = jnp.transpose(w, (2, 1, 0))                           # [C, E, fs]
        conv = jax.lax.conv_general_dilated(
            x_ncw, w_pt, window_strides=(1,), padding="VALID",
            dimension_numbers=("NCH", "OIH", "NCH"),
        ) + b[None, :, None]
        conv = jnp.maximum(conv, 0.0)
        feats.append(jnp.max(conv, axis=2))                          # [B, C]
    feat = jnp.concatenate(feats, axis=1)
    h = jnp.maximum(feat @ params["fc1_w"] + params["fc1_b"], 0.0)
    return h @ params["fc2_w"] + params["fc2_b"]


if __name__ == "__main__":
    B, S = 16, 16                # batch, sequence length
    VOCAB, E = 64, 32            # vocab_size, embedding_dim
    FILTER_SIZES = (3, 4, 5)     # args.filter_sizes
    C = 16                       # args.filter_channels
    FC0 = 32                     # args.fc_shapes[0]
    NUM_LABELS = 4

    key = jax.random.PRNGKey(0)
    keys = jax.random.split(key, 6 + 2 * len(FILTER_SIZES))
    k_iter = iter(keys)

    params = {
        "embedding": jax.random.normal(next(k_iter), (VOCAB, E), jnp.float32) * 0.1,
        "conv_ws": [
            jax.random.normal(next(k_iter), (fs, E, C), jnp.float32) * 0.1
            for fs in FILTER_SIZES
        ],
        "conv_bs": [
            jax.random.normal(next(k_iter), (C,), jnp.float32) * 0.1
            for _ in FILTER_SIZES
        ],
        "fc1_w": jax.random.normal(next(k_iter), (len(FILTER_SIZES) * C, FC0),
                                   jnp.float32) * 0.1,
        "fc1_b": jax.random.normal(next(k_iter), (FC0,), jnp.float32) * 0.1,
        "fc2_w": jax.random.normal(next(k_iter), (FC0, NUM_LABELS),
                                   jnp.float32) * 0.1,
        "fc2_b": jax.random.normal(next(k_iter), (NUM_LABELS,), jnp.float32) * 0.1,
    }

    input_ids = jax.random.randint(next(k_iter), (B, S), 0, VOCAB,
                                   dtype=jnp.int32)

    packed = pack_params(params, filter_sizes=FILTER_SIZES, filter_channels=C,
                         seq_len=S, fc_hidden=FC0, num_labels=NUM_LABELS)

    out = hybrid_classifier_forward(params, packed, input_ids,
                                    num_labels=NUM_LABELS)
    out = jax.block_until_ready(out)

    ref = jax.block_until_ready(reference_forward(params, input_ids))
    assert out.shape == (B, NUM_LABELS)
    # bf16 MXU inputs (f32 accumulation) -> loosened tolerance vs f32 reference.
    assert jnp.allclose(out, ref, rtol=2e-2, atol=2e-2), (out, ref)

    print("KERNEL_OK")
</pallas_src>

<mosaic_0001>
module attributes {stable_mosaic.version = 11 : i64} {
  func.func @_fused_kernel(%arg0: i32, %arg1: memref<128x160xbf16, #tpu.memory_space<vmem>>, %arg2: memref<160x128xbf16, #tpu.memory_space<vmem>>, %arg3: memref<1x1x128xf32, #tpu.memory_space<vmem>>, %arg4: memref<1x1x128xi32, #tpu.memory_space<vmem>>, %arg5: memref<128x128xbf16, #tpu.memory_space<vmem>>, %arg6: memref<1x128xf32, #tpu.memory_space<vmem>>, %arg7: memref<128x128xbf16, #tpu.memory_space<vmem>>, %arg8: memref<1x128xf32, #tpu.memory_space<vmem>>, %arg9: memref<8x128xf32, #tpu.memory_space<vmem>>) attributes {dimension_semantics = [#tpu.dimension_semantics<parallel>], iteration_bounds = array<i64: 2>, scalar_prefetch = 0 : i64, scratch_operands = 0 : i64, tpu.core_type = #tpu.core_type<tc>, window_params = [{transform_indices = @transform_0, window_bounds = array<i64: 128, 160>}, {pipeline_mode = #tpu.pipeline_mode<synchronous>, transform_indices = @transform_1, window_bounds = array<i64: 160, 128>}, {pipeline_mode = #tpu.pipeline_mode<synchronous>, transform_indices = @transform_2, window_bounds = array<i64: 1, 1, 128>}, {pipeline_mode = #tpu.pipeline_mode<synchronous>, transform_indices = @transform_3, window_bounds = array<i64: 1, 1, 128>}, {pipeline_mode = #tpu.pipeline_mode<synchronous>, transform_indices = @transform_4, window_bounds = array<i64: 128, 128>}, {pipeline_mode = #tpu.pipeline_mode<synchronous>, transform_indices = @transform_5, window_bounds = array<i64: 1, 128>}, {pipeline_mode = #tpu.pipeline_mode<synchronous>, transform_indices = @transform_6, window_bounds = array<i64: 128, 128>}, {pipeline_mode = #tpu.pipeline_mode<synchronous>, transform_indices = @transform_7, window_bounds = array<i64: 1, 128>}, {transform_indices = @transform_8, window_bounds = array<i64: 8, 128>}]} {
    %c0 = arith.constant 0 : index
    %c0_0 = arith.constant 0 : index
    %0 = vector.load %arg1[%c0, %c0_0] : memref<128x160xbf16, #tpu.memory_space<vmem>>, vector<128x160xbf16>
    %c0_1 = arith.constant 0 : index
    %c0_2 = arith.constant 0 : index
    %1 = vector.load %arg2[%c0_1, %c0_2] : memref<160x128xbf16, #tpu.memory_space<vmem>>, vector<160x128xbf16>
    %cst = arith.constant dense<0.000000e+00> : vector<128x128xf32>
    %2 = tpu.matmul %0, %1, %cst {dimension_numbers = #tpu.dot_dimension_numbers<[1], [0], [0], [1], [0, 0, 1, 1], [], []>} : vector<128x160xbf16>, vector<160x128xbf16>, vector<128x128xf32> -> vector<128x128xf32>
    %3 = vector.shape_cast %2 : vector<128x128xf32> to vector<8x16x128xf32>
    %4 = tpu.iota {dimensions = array<i32: 1>} : vector<1x16x128xi32>
    %c0_3 = arith.constant 0 : index
    %c0_4 = arith.constant 0 : index
    %c0_5 = arith.constant 0 : index
    %5 = vector.load %arg4[%c0_3, %c0_4, %c0_5] : memref<1x1x128xi32, #tpu.memory_space<vmem>>, vector<1x1x128xi32>
    %6 = vector.broadcast %5 : vector<1x1x128xi32> to vector<1x16x128xi32>
    %7 = arith.cmpi slt, %4, %6 : vector<1x16x128xi32>
    %c0_6 = arith.constant 0 : index
    %c0_7 = arith.constant 0 : index
    %c0_8 = arith.constant 0 : index
    %8 = vector.load %arg3[%c0_6, %c0_7, %c0_8] : memref<1x1x128xf32, #tpu.memory_space<vmem>>, vector<1x1x128xf32>
    %9 = vector.broadcast %8 : vector<1x1x128xf32> to vector<8x16x128xf32>
    %10 = arith.addf %3, %9 : vector<8x16x128xf32>
    %cst_9 = arith.constant 0.000000e+00 : f32
    %11 = vector.broadcast %cst_9 : f32 to vector<8x16x128xf32>
    %12 = arith.maximumf %10, %11 : vector<8x16x128xf32>
    %cst_10 = arith.constant 0.000000e+00 : f32
    %13 = vector.shape_cast %7 : vector<1x16x128xi1> to vector<1x16x128xi1>
    %14 = vector.broadcast %13 : vector<1x16x128xi1> to vector<8x16x128xi1>
    %15 = vector.broadcast %cst_10 : f32 to vector<8x16x128xf32>
    %16 = arith.select %14, %12, %15 : vector<8x16x128xi1>, vector<8x16x128xf32>
    %cst_11 = arith.constant dense<0xFF800000> : vector<8x128xf32>
    %17 = vector.multi_reduction <maximumf>, %16, %cst_11 [1] : vector<8x16x128xf32> to vector<8x128xf32>
    %18 = arith.truncf %17 : vector<8x128xf32> to vector<8x128xbf16>
    %c0_12 = arith.constant 0 : index
    %c0_13 = arith.constant 0 : index
    %19 = vector.load %arg5[%c0_12, %c0_13] : memref<128x128xbf16, #tpu.memory_space<vmem>>, vector<128x128xbf16>
    %cst_14 = arith.constant dense<0.000000e+00> : vector<8x128xf32>
    %20 = tpu.matmul %18, %19, %cst_14 {dimension_numbers = #tpu.dot_dimension_numbers<[1], [0], [0], [1], [0, 0, 1, 1], [], []>} : vector<8x128xbf16>, vector<128x128xbf16>, vector<8x128xf32> -> vector<8x128xf32>
    %c0_15 = arith.constant 0 : index
    %c0_16 = arith.constant 0 : index
    %21 = vector.load %arg6[%c0_15, %c0_16] : memref<1x128xf32, #tpu.memory_space<vmem>>, vector<1x128xf32>
    %22 = vector.broadcast %21 : vector<1x128xf32> to vector<8x128xf32>
    %23 = arith.addf %20, %22 : vector<8x128xf32>
    %cst_17 = arith.constant 0.000000e+00 : f32
    %24 = vector.broadcast %cst_17 : f32 to vector<8x128xf32>
    %25 = arith.maximumf %23, %24 : vector<8x128xf32>
    %26 = arith.truncf %25 : vector<8x128xf32> to vector<8x128xbf16>
    %c0_18 = arith.constant 0 : index
    %c0_19 = arith.constant 0 : index
    %27 = vector.load %arg7[%c0_18, %c0_19] : memref<128x128xbf16, #tpu.memory_space<vmem>>, vector<128x128xbf16>
    %cst_20 = arith.constant dense<0.000000e+00> : vector<8x128xf32>
    %28 = tpu.matmul %26, %27, %cst_20 {dimension_numbers = #tpu.dot_dimension_numbers<[1], [0], [0], [1], [0, 0, 1, 1], [], []>} : vector<8x128xbf16>, vector<128x128xbf16>, vector<8x128xf32> -> vector<8x128xf32>
    %c0_21 = arith.constant 0 : index
    %c0_22 = arith.constant 0 : index
    %29 = vector.load %arg8[%c0_21, %c0_22] : memref<1x128xf32, #tpu.memory_space<vmem>>, vector<1x128xf32>
    %30 = vector.broadcast %29 : vector<1x128xf32> to vector<8x128xf32>
    %31 = arith.addf %28, %30 : vector<8x128xf32>
    %c0_23 = arith.constant 0 : index
    %c0_24 = arith.constant 0 : index
    %32 = vector.load %arg9[%c0_23, %c0_24] : memref<8x128xf32, #tpu.memory_space<vmem>>, vector<8x128xf32>
    tpu.vector_store %arg9[%c0_23, %c0_24], %31 {strides = array<i32>} : memref<8x128xf32, #tpu.memory_space<vmem>>, vector<8x128xf32>,
    return
  }
  func.func @transform_0(%arg0: i32) -> (i32, i32) {
    %c0_i32 = arith.constant 0 : i32
    %c0_i32_0 = arith.constant 0 : i32
    return %arg0, %c0_i32 : i32, i32
  }
  func.func @transform_1(%arg0: i32) -> (i32, i32) {
    %c0_i32 = arith.constant 0 : i32
    %c0_i32_0 = arith.constant 0 : i32
    %c0_i32_1 = arith.constant 0 : i32
    return %c0_i32, %c0_i32_0 : i32, i32
  }
  func.func @transform_2(%arg0: i32) -> (i32, i32, i32) {
    %c0_i32 = arith.constant 0 : i32
    %c0_i32_0 = arith.constant 0 : i32
    %c0_i32_1 = arith.constant 0 : i32
    %c0_i32_2 = arith.constant 0 : i32
    return %c0_i32, %c0_i32_0, %c0_i32_1 : i32, i32, i32
  }
  func.func @transform_3(%arg0: i32) -> (i32, i32, i32) {
    %c0_i32 = arith.constant 0 : i32
    %c0_i32_0 = arith.constant 0 : i32
    %c0_i32_1 = arith.constant 0 : i32
    %c0_i32_2 = arith.constant 0 : i32
    return %c0_i32, %c0_i32_0, %c0_i32_1 : i32, i32, i32
  }
  func.func @transform_4(%arg0: i32) -> (i32, i32) {
    %c0_i32 = arith.constant 0 : i32
    %c0_i32_0 = arith.constant 0 : i32
    %c0_i32_1 = arith.constant 0 : i32
    return %c0_i32, %c0_i32_0 : i32, i32
  }
  func.func @transform_5(%arg0: i32) -> (i32, i32) {
    %c0_i32 = arith.constant 0 : i32
    %c0_i32_0 = arith.constant 0 : i32
    %c0_i32_1 = arith.constant 0 : i32
    return %c0_i32, %c0_i32_0 : i32, i32
  }
  func.func @transform_6(%arg0: i32) -> (i32, i32) {
    %c0_i32 = arith.constant 0 : i32
    %c0_i32_0 = arith.constant 0 : i32
    %c0_i32_1 = arith.constant 0 : i32
    return %c0_i32, %c0_i32_0 : i32, i32
  }
  func.func @transform_7(%arg0: i32) -> (i32, i32) {
    %c0_i32 = arith.constant 0 : i32
    %c0_i32_0 = arith.constant 0 : i32
    %c0_i32_1 = arith.constant 0 : i32
    return %c0_i32, %c0_i32_0 : i32, i32
  }
  func.func @transform_8(%arg0: i32) -> (i32, i32) {
    %c0_i32 = arith.constant 0 : i32
    %c0_i32_0 = arith.constant 0 : i32
    return %arg0, %c0_i32 : i32, i32
  }
}

module attributes {stable_mosaic.version = 11 : i64} {
  func.func @_fused_kernel(%arg0: i32, %arg1: memref<128x160xbf16, #tpu.memory_space<vmem>>, %arg2: memref<160x128xbf16, #tpu.memory_space<vmem>>, %arg3: memref<1x1x128xf32, #tpu.memory_space<vmem>>, %arg4: memref<1x1x128xi32, #tpu.memory_space<vmem>>, %arg5: memref<128x128xbf16, #tpu.memory_space<vmem>>, %arg6: memref<1x128xf32, #tpu.memory_space<vmem>>, %arg7: memref<128x128xbf16, #tpu.memory_space<vmem>>, %arg8: memref<1x128xf32, #tpu.memory_space<vmem>>, %arg9: memref<8x128xf32, #tpu.memory_space<vmem>>) attributes {dimension_semantics = [#tpu.dimension_semantics<parallel>], iteration_bounds = array<i64: 2>, scalar_prefetch = 0 : i64, scratch_operands = 0 : i64, tpu.core_type = #tpu.core_type<tc>, window_params = [{transform_indices = @transform_0, window_bounds = array<i64: 128, 160>}, {pipeline_mode = #tpu.pipeline_mode<synchronous>, transform_indices = @transform_1, window_bounds = array<i64: 160, 128>}, {pipeline_mode = #tpu.pipeline_mode<synchronous>, transform_indices = @transform_2, window_bounds = array<i64: 1, 1, 128>}, {pipeline_mode = #tpu.pipeline_mode<synchronous>, transform_indices = @transform_3, window_bounds = array<i64: 1, 1, 128>}, {pipeline_mode = #tpu.pipeline_mode<synchronous>, transform_indices = @transform_4, window_bounds = array<i64: 128, 128>}, {pipeline_mode = #tpu.pipeline_mode<synchronous>, transform_indices = @transform_5, window_bounds = array<i64: 1, 128>}, {pipeline_mode = #tpu.pipeline_mode<synchronous>, transform_indices = @transform_6, window_bounds = array<i64: 128, 128>}, {pipeline_mode = #tpu.pipeline_mode<synchronous>, transform_indices = @transform_7, window_bounds = array<i64: 1, 128>}, {transform_indices = @transform_8, window_bounds = array<i64: 8, 128>}]} {
    %c0 = arith.constant 0 : index
    %c0_0 = arith.constant 0 : index
    %0 = vector.load %arg1[%c0, %c0_0] : memref<128x160xbf16, #tpu.memory_space<vmem>>, vector<128x160xbf16>
    %c0_1 = arith.constant 0 : index
    %c0_2 = arith.constant 0 : index
    %1 = vector.load %arg2[%c0_1, %c0_2] : memref<160x128xbf16, #tpu.memory_space<vmem>>, vector<160x128xbf16>
    %cst = arith.constant dense<0.000000e+00> : vector<128x128xf32>
    %2 = tpu.matmul %0, %1, %cst {dimension_numbers = #tpu.dot_dimension_numbers<[1], [0], [0], [1], [0, 0, 1, 1], [], []>} : vector<128x160xbf16>, vector<160x128xbf16>, vector<128x128xf32> -> vector<128x128xf32>
    %3 = vector.shape_cast %2 : vector<128x128xf32> to vector<8x16x128xf32>
    %4 = tpu.iota {dimensions = array<i32: 1>} : vector<1x16x128xi32>
    %c0_3 = arith.constant 0 : index
    %c0_4 = arith.constant 0 : index
    %c0_5 = arith.constant 0 : index
    %5 = vector.load %arg4[%c0_3, %c0_4, %c0_5] : memref<1x1x128xi32, #tpu.memory_space<vmem>>, vector<1x1x128xi32>
    %6 = vector.broadcast %5 : vector<1x1x128xi32> to vector<1x16x128xi32>
    %7 = arith.cmpi slt, %4, %6 : vector<1x16x128xi32>
    %c0_6 = arith.constant 0 : index
    %c0_7 = arith.constant 0 : index
    %c0_8 = arith.constant 0 : index
    %8 = vector.load %arg3[%c0_6, %c0_7, %c0_8] : memref<1x1x128xf32, #tpu.memory_space<vmem>>, vector<1x1x128xf32>
    %9 = vector.broadcast %8 : vector<1x1x128xf32> to vector<8x16x128xf32>
    %10 = arith.addf %3, %9 : vector<8x16x128xf32>
    %cst_9 = arith.constant 0.000000e+00 : f32
    %11 = vector.broadcast %cst_9 : f32 to vector<8x16x128xf32>
    %12 = arith.maximumf %10, %11 : vector<8x16x128xf32>
    %cst_10 = arith.constant 0.000000e+00 : f32
    %13 = vector.shape_cast %7 : vector<1x16x128xi1> to vector<1x16x128xi1>
    %14 = vector.broadcast %13 : vector<1x16x128xi1> to vector<8x16x128xi1>
    %15 = vector.broadcast %cst_10 : f32 to vector<8x16x128xf32>
    %16 = arith.select %14, %12, %15 : vector<8x16x128xi1>, vector<8x16x128xf32>
    %cst_11 = arith.constant dense<0xFF800000> : vector<8x128xf32>
    %17 = vector.multi_reduction <maximumf>, %16, %cst_11 [1] : vector<8x16x128xf32> to vector<8x128xf32>
    %18 = arith.truncf %17 : vector<8x128xf32> to vector<8x128xbf16>
    %c0_12 = arith.constant 0 : index
    %c0_13 = arith.constant 0 : index
    %19 = vector.load %arg5[%c0_12, %c0_13] : memref<128x128xbf16, #tpu.memory_space<vmem>>, vector<128x128xbf16>
    %cst_14 = arith.constant dense<0.000000e+00> : vector<8x128xf32>
    %20 = tpu.matmul %18, %19, %cst_14 {dimension_numbers = #tpu.dot_dimension_numbers<[1], [0], [0], [1], [0, 0, 1, 1], [], []>} : vector<8x128xbf16>, vector<128x128xbf16>, vector<8x128xf32> -> vector<8x128xf32>
    %c0_15 = arith.constant 0 : index
    %c0_16 = arith.constant 0 : index
    %21 = vector.load %arg6[%c0_15, %c0_16] : memref<1x128xf32, #tpu.memory_space<vmem>>, vector<1x128xf32>
    %22 = vector.broadcast %21 : vector<1x128xf32> to vector<8x128xf32>
    %23 = arith.addf %20, %22 : vector<8x128xf32>
    %cst_17 = arith.constant 0.000000e+00 : f32
    %24 = vector.broadcast %cst_17 : f32 to vector<8x128xf32>
    %25 = arith.maximumf %23, %24 : vector<8x128xf32>
    %26 = arith.truncf %25 : vector<8x128xf32> to vector<8x128xbf16>
    %c0_18 = arith.constant 0 : index
    %c0_19 = arith.constant 0 : index
    %27 = vector.load %arg7[%c0_18, %c0_19] : memref<128x128xbf16, #tpu.memory_space<vmem>>, vector<128x128xbf16>
    %cst_20 = arith.constant dense<0.000000e+00> : vector<8x128xf32>
    %28 = tpu.matmul %26, %27, %cst_20 {dimension_numbers = #tpu.dot_dimension_numbers<[1], [0], [0], [1], [0, 0, 1, 1], [], []>} : vector<8x128xbf16>, vector<128x128xbf16>, vector<8x128xf32> -> vector<8x128xf32>
    %c0_21 = arith.constant 0 : index
    %c0_22 = arith.constant 0 : index
    %29 = vector.load %arg8[%c0_21, %c0_22] : memref<1x128xf32, #tpu.memory_space<vmem>>, vector<1x128xf32>
    %30 = vector.broadcast %29 : vector<1x128xf32> to vector<8x128xf32>
    %31 = arith.addf %28, %30 : vector<8x128xf32>
    %c0_23 = arith.constant 0 : index
    %c0_24 = arith.constant 0 : index
    %32 = vector.load %arg9[%c0_23, %c0_24] : memref<8x128xf32, #tpu.memory_space<vmem>>, vector<8x128xf32>
    tpu.vector_store %arg9[%c0_23, %c0_24], %31 {strides = array<i32>} : memref<8x128xf32, #tpu.memory_space<vmem>>, vector<8x128xf32>,
    return
  }
  func.func @transform_0(%arg0: i32) -> (i32, i32) {
    %c0_i32 = arith.constant 0 : i32
    %c0_i32_0 = arith.constant 0 : i32
    return %arg0, %c0_i32 : i32, i32
  }
  func.func @transform_1(%arg0: i32) -> (i32, i32) {
    %c0_i32 = arith.constant 0 : i32
    %c0_i32_0 = arith.constant 0 : i32
    %c0_i32_1 = arith.constant 0 : i32
    return %c0_i32, %c0_i32_0 : i32, i32
  }
  func.func @transform_2(%arg0: i32) -> (i32, i32, i32) {
    %c0_i32 = arith.constant 0 : i32
    %c0_i32_0 = arith.constant 0 : i32
    %c0_i32_1 = arith.constant 0 : i32
    %c0_i32_2 = arith.constant 0 : i32
    return %c0_i32, %c0_i32_0, %c0_i32_1 : i32, i32, i32
  }
  func.func @transform_3(%arg0: i32) -> (i32, i32, i32) {
    %c0_i32 = arith.constant 0 : i32
    %c0_i32_0 = arith.constant 0 : i32
    %c0_i32_1 = arith.constant 0 : i32
    %c0_i32_2 = arith.constant 0 : i32
    return %c0_i32, %c0_i32_0, %c0_i32_1 : i32, i32, i32
  }
  func.func @transform_4(%arg0: i32) -> (i32, i32) {
    %c0_i32 = arith.constant 0 : i32
    %c0_i32_0 = arith.constant 0 : i32
    %c0_i32_1 = arith.constant 0 : i32
    return %c0_i32, %c0_i32_0 : i32, i32
  }
  func.func @transform_5(%arg0: i32) -> (i32, i32) {
    %c0_i32 = arith.constant 0 : i32
    %c0_i32_0 = arith.constant 0 : i32
    %c0_i32_1 = arith.constant 0 : i32
    return %c0_i32, %c0_i32_0 : i32, i32
  }
  func.func @transform_6(%arg0: i32) -> (i32, i32) {
    %c0_i32 = arith.constant 0 : i32
    %c0_i32_0 = arith.constant 0 : i32
    %c0_i32_1 = arith.constant 0 : i32
    return %c0_i32, %c0_i32_0 : i32, i32
  }
  func.func @transform_7(%arg0: i32) -> (i32, i32) {
    %c0_i32 = arith.constant 0 : i32
    %c0_i32_0 = arith.constant 0 : i32
    %c0_i32_1 = arith.constant 0 : i32
    return %c0_i32, %c0_i32_0 : i32, i32
  }
  func.func @transform_8(%arg0: i32) -> (i32, i32) {
    %c0_i32 = arith.constant 0 : i32
    %c0_i32_0 = arith.constant 0 : i32
    return %arg0, %c0_i32 : i32, i32
  }
}

</mosaic_0001>

<bundles_post_ra>
// kernel: tpu_custom_call.1
= control target key start
LH: loop header
LB: loop body
LE: loop exit
PB: predicated region body
PF: predicated region fallthrough
CT: control target
= control target key end

     0   :  { %13 = vsyncpa [#allocation3], 0  ;;  %s1686_s0 = inlined_call_operand.vmem [shape: bf16[256,160], index: 0, kind: input, shape index: {}]   ;;  %s1687_s1 = inlined_call_operand.vmem [shape: bf16[160,128], index: 1, kind: input, shape index: {}]   ;;  %s1688_s2 = inlined_call_operand.vmem [shape: f32[1,1,128], index: 2, kind: input, shape index: {}]   ;;  %s1689_s3 = inlined_call_operand.vmem [shape: s32[1,1,128], index: 3, kind: input, shape index: {}]   ;;  %s1690_s4 = inlined_call_operand.vmem [shape: bf16[128,128], index: 4, kind: input, shape index: {}]   ;;  %s1691_s5 = inlined_call_operand.vmem [shape: f32[1,128], index: 5, kind: input, shape index: {}]   ;;  %s1692_s6 = inlined_call_operand.vmem [shape: bf16[128,128], index: 6, kind: input, shape index: {}]   ;;  %s1693_s7 = inlined_call_operand.vmem [shape: f32[1,128], index: 7, kind: input, shape index: {}]   ;;  %s1694_s8 = inlined_call_operand.hbm [shape: f32[16,128], index: 8, kind: output, shape index: {}]  }
   0x1   :  { %15 = vsyncpa [#allocation3 + $0x1], 0  ;;  %s1393_s27 = smov 0   ;;  %s1395_s28 = smov 0  }
   0x2   :  { %s1397_s29 = smov 0   ;;  %s1399_s30 = smov 0  }
   0x3 LB: > { %s1414_s9 = sadd.s32 4294967295, %s1342_s30   ;;  %s1063_s10 = sadd.s32 4294967294, %s1342_s30   ;;  %s1342_s30 = sphi %s1399_s30, %s1704_s30   ;;  %s1338_s29 = sphi %s1397_s29, %s1703_s29   ;;  %s1334_s28 = sphi %s1395_s28, %s1702_s28   ;;  %s1330_s27 = sphi %s1393_s27, %s1701_s27  }
   0x4   : > { %s1418_s11 = sadd.s32 1, %s1342_s30   ;;  %s201_s12 = sadd.s32 1, %s1338_s29 }
   0x5   : > { %s198_s13 = ssub.s32 %s1342_s30, %s1418_s11  ;;  %p211_p0 = scmp.ne.s32.totalorder %s1338_s29, %s1334_s28 }
   0x6   : > { %p199_p1 = scmp.eq.s32.totalorder %s198_s13, 0  ;;  %p212_p2 = scmp.eq.s32.totalorder %s1414_s9, 1 }
   0x7   : > { %p217_p3 = scmp.ne.s32.totalorder %s1334_s28, %s1330_s27  ;;  %p218_p4 = scmp.eq.s32.totalorder %s1063_s10, 1 }
   0x8   : > { %s1429_s14 = scalar_select %p199_p1, %s1338_s29, %s201_s12  }
   0x9   : > { %p1431_p5 = por %p212_p2, %p211_p0  ;;  %p1435_p6 = por %p218_p4, %p217_p3 }
   0xa   : > { %p1066_p7 = scmp.ge.s32.totalorder %s1342_s30, 1  ;;  %p267_p8 = scmp.lt.s32.totalorder %s1342_s30, 3 }
   0xc   : > { %p268_p9 = pnand %p1066_p7, %p267_p8 }
   0xd   : > { %v1230_v0 = vld [vmem:[%s1687_s1] sm:$0xff] (!%p268_p9)   ;;  %v1344_v1 = vmov (!%p268_p9), 0   ;;  %s1068_s19 = sshll.u32 (!%p268_p9), %s1414_s9, 4  ;;  %v1231_v2 = vld [vmem:[%s1687_s1 + $0x8] sm:$0xff] (!%p268_p9)   ;;  %v1232_v3 = vld [vmem:[%s1687_s1 + $0x10] sm:$0xff] (!%p268_p9)   ;;  %vm478_vm0 = vcmask (!%p268_p9), 261120   ;;  %v600_v36 = vlaneseq (!%p268_p9) }
   0xe   : > { %271 = sbr.rel (%p268_p9) target bundleno = 796 (0x31c), region = 52  ;;  %503 = vmatprep.subr.bf16.mxu0 (!%p268_p9), %v1344_v1  ;;  %p303_p10 = scmp.lt.s32.totalorder (!%p268_p9), %s1068_s19, 31  ;;  %v1233_v4 = vld [vmem:[%s1687_s1 + $0x18] sm:$0xff] (!%p268_p9)   ;;  %v1234_v6 = vld [vmem:[%s1687_s1 + $0x20] sm:$0xff] (!%p268_p9)   ;;  %v1235_v7 = vld [vmem:[%s1687_s1 + $0x28] sm:$0xff] (!%p268_p9)   ;;  %v1345_v28 = vmov (!%p268_p9), 0.0  }
   0xf   : > { %504 = vmatpush1.bf16.msra.mxu0 (!%p268_p9), %v1230_v0  ;;  %v1236_v8 = vld [vmem:[%s1687_s1 + $0x30] sm:$0xff] (!%p268_p9)   ;;  %v1237_v9 = vld [vmem:[%s1687_s1 + $0x38] sm:$0xff] (!%p268_p9)   ;;  %v1238_v10 = vld [vmem:[%s1687_s1 + $0x40] sm:$0xff] (!%p268_p9)   ;;  %1148 = vmatprep.subr.bf16.mxu1 (!%p268_p9), %v1345_v28  ;;  %vm1346_vm1 = vmmov (!%p268_p9), 0   ;;  %v601_v37 = vshrl.u32 (!%p268_p9), %v600_v36, 7  ;;  %vm772_vm4 = vcmask (!%p268_p9), 1041409  }
  0x10   : > { %505 = vmatprep.subr.bf16.mxu0 (!%p268_p9), %v1344_v1  ;;  %v1239_v11 = vld [vmem:[%s1687_s1 + $0x48] sm:$0xff] (!%p268_p9)   ;;  %v1264_v27 = vld [vmem:[%s1690_s4] sm:$0xff] (!%p268_p9)   ;;  %v1266_v30 = vld [vmem:[%s1690_s4 + $0x10] sm:$0xff] (!%p268_p9)   ;;  %1164 = vmatprep.mubr.msk.bf16.mxu1 (!%p268_p9), %vm1346_vm1, %v1345_v28  ;;  %vm774_vm5 = vcmask (!%p268_p9), 1042434   ;;  %vm776_vm6 = vcmask (!%p268_p9), 1043459   ;;  %vm778_vm7 = vcmask (!%p268_p9), 1044484  }
  0x11   : > { %1149 = vmatpush3.bf16.msra.mxu1 (!%p268_p9), %v1264_v27  ;;  %v1265_v29 = vld [vmem:[%s1690_s4 + $0x8] sm:$0xff] (!%p268_p9)   ;;  %v1267_v31 = vld [vmem:[%s1690_s4 + $0x18] sm:$0xff] (!%p268_p9)   ;;  %v1268_v32 = vld [vmem:[%s1690_s4 + $0x20] sm:$0xff] (!%p268_p9)   ;;  %v602_v40 = vadd.s32 (!%p268_p9), 8, %v601_v37  ;;  %vm780_vm8 = vcmask (!%p268_p9), 1045509   ;;  %vm782_vm9 = vcmask (!%p268_p9), 1046534  }
  0x12   : > { %1150 = vmatprep.subr.bf16.mxu1 (!%p268_p9), %v1345_v28  ;;  %v1269_v33 = vld [vmem:[%s1690_s4 + $0x28] sm:$0xff] (!%p268_p9)   ;;  %v1270_v34 = vld [vmem:[%s1690_s4 + $0x30] sm:$0xff] (!%p268_p9)   ;;  %v1271_v35 = vld [vmem:[%s1690_s4 + $0x38] sm:$0xff] (!%p268_p9)   ;;  %vm784_vm10 = vcmask (!%p268_p9), 1047559   ;;  %s299_s13 = sand.u32 (!%p268_p9), 1, %s1334_s28   ;;  %s1126_s20 = sshll.u32 (!%p268_p9), %s1414_s9, 7 }
  0x13   : > { %506 = vmatpush1.bf16.msra.mxu0 (!%p268_p9), %v1231_v2  ;;  %v1539_v38 = vld [vmem:[%s1688_s2] ss:$0 sm:$0xff] (!%p268_p9)  ;;  %s1067_s17 = sshll.u32 (!%p268_p9), %s299_s13, 3  ;;  %s991_s25 = scalar_lea.sflag (!%p268_p9), [#allocation3], %s299_s13 }
  0x14   : > { %507 = vmatprep.subr.bf16.mxu0 (!%p268_p9), %v1344_v1  ;;  %v1105_v41 = vld [vmem:[%s1689_s3] ss:$0 sm:$0xff] (!%p268_p9)  ;;  %s301_s21 = scalar_lea.vmem (!%p268_p9), [#allocation2], %s1067_s17  ;;  %s1347_s26 = smov (!%p268_p9), [#allocation2]  }
  0x15   : > { %s1706_s19 = smov (!%p303_p10, %s1068_s19), 31  ;;  %1151 = vmatpush3.bf16.msra.mxu1 %v1265_v29  ;;  %vm1546_vm2 = vcmp.lt.s32.totalorder %v601_v37, %v1105_v41  ;;  %vm1550_vm3 = vcmp.lt.s32.totalorder %v602_v40, %v1105_v41  ;;  %s1284_s12 = sshll.u32 %s1347_s26, 4  ;;  %s1285_s12 = int_to_ptr.vmem [resolvable:$false] %s1284_s12 }
  0x16   : > { %s1129_s24 = sshll.u32 %s1706_s19, 3  ;;  %1152 = vmatprep.subr.bf16.mxu1 %v1345_v28  ;;  %s1286_s17 = scalar_lea.vmem %s1285_s12, 256 }
  0x17   : > { %s1454_s10 = scalar_lea.vmem %s1686_s0, %s1129_s24  ;;  %508 = vmatpush1.bf16.msra.mxu0 %v1232_v3  ;;  %s1644_s24 = scalar_lea.hbm %s1694_s8, %s1126_s20 }
  0x18   : > { %509 = vmatprep.subr.bf16.mxu0 %v1344_v1  ;;  %v1242_v5 = vld [vmem:[%s1454_s10 + $0x4] ss:$8 sps:$4 sm:$0xff]   ;;  %v1240_v12 = vld [vmem:[%s1454_s10] ss:$8 sps:$4 sm:$0xff]   ;;  %v1243_v13 = vld [vmem:[%s1454_s10 + $0x14] ss:$8 sps:$4 sm:$0xff]  }
  0x19   : > { %1097 = vmatprep.mubr.msk.bf16.mxu0 %vm478_vm0, %v1242_v5  ;;  %v1245_v14 = vld [vmem:[%s1454_s10 + $0x10] ss:$8 sps:$4 sm:$0xff]   ;;  %v1246_v15 = vld [vmem:[%s1454_s10 + $0x24] ss:$8 sps:$4 sm:$0xff]   ;;  %v1248_v16 = vld [vmem:[%s1454_s10 + $0x20] ss:$8 sps:$4 sm:$0xff]   ;;  %1153 = vmatpush3.bf16.msra.mxu1 %v1266_v30 }
  0x1a   : > { %v1249_v17 = vld [vmem:[%s1454_s10 + $0x34] ss:$8 sps:$4 sm:$0xff]   ;;  %v1251_v18 = vld [vmem:[%s1454_s10 + $0x30] ss:$8 sps:$4 sm:$0xff]   ;;  %v1252_v19 = vld [vmem:[%s1454_s10 + $0x44] ss:$8 sps:$4 sm:$0xff]   ;;  %1154 = vmatprep.subr.bf16.mxu1 %v1345_v28 }
  0x1b   : > { %510 = vmatpush1.bf16.msra.mxu0 %v1233_v4  ;;  %v1254_v20 = vld [vmem:[%s1454_s10 + $0x40] ss:$8 sps:$4 sm:$0xff]   ;;  %v1255_v21 = vld [vmem:[%s1454_s10 + $0x54] ss:$8 sps:$4 sm:$0xff]   ;;  %v1257_v22 = vld [vmem:[%s1454_s10 + $0x50] ss:$8 sps:$4 sm:$0xff]  }
  0x1c   : > { %511 = vmatprep.subr.bf16.mxu0 %v1344_v1  ;;  %v1258_v23 = vld [vmem:[%s1454_s10 + $0x64] ss:$8 sps:$4 sm:$0xff]   ;;  %v1260_v24 = vld [vmem:[%s1454_s10 + $0x60] ss:$8 sps:$4 sm:$0xff]   ;;  %v1261_v25 = vld [vmem:[%s1454_s10 + $0x74] ss:$8 sps:$4 sm:$0xff]  }
  0x1d   : > { %v1263_v26 = vld [vmem:[%s1454_s10 + $0x70] ss:$8 sps:$4 sm:$0xff]   ;;  %1155 = vmatpush3.bf16.msra.mxu1 %v1267_v31  ;;  %s1004_s10 = sshll.u32 %s301_s21, 4  ;;  %s1646_s10 = int_to_ptr.vmem [resolvable:$true] %s1004_s10 }
  0x1e   : > { %1156 = vmatprep.subr.bf16.mxu1 %v1345_v28  ;;  %s1280_s9 = scalar_lea.vmem %s1646_s10, 128  ;;  %p1287_p0 = scmp.lt.s32.totalorder %s1646_s10, %s1285_s12 }
  0x1f   : > { %512 = vmatpush1.bf16.msra.mxu0 %v1234_v6  ;;  %p1281_p11 = scmp.ne.s32.totalorder %s1646_s10, %s1280_s9  ;;  %p1288_p1 = scmp.lt.s32.totalorder %s1286_s17, %s1280_s9 }
  0x20   : > { %513 = vmatprep.subr.bf16.mxu0 %v1344_v1 }
  0x21   : > { %1157 = vmatpush3.bf16.msra.mxu1 %v1268_v32  ;;  %p1282_p12 = pnand %p1281_p11, %p1431_p5  ;;  %p1289_p2 = por %p1288_p1, %p1287_p0 }
  0x22   : > { %1158 = vmatprep.subr.bf16.mxu1 %v1345_v28 }
  0x23   : > { %514 = vmatpush1.bf16.msra.mxu0 %v1235_v7  ;;  %p1283_p13 = pneg %p1282_p12 }
  0x24   : > { %515 = vmatprep.subr.bf16.mxu0 %v1344_v1 }
  0x25   : > { %1159 = vmatpush3.bf16.msra.mxu1 %v1269_v33  ;;  %p1290_p3 = pnand %p1289_p2, %p1283_p13 }
  0x26   : > { %1160 = vmatprep.subr.bf16.mxu1 %v1345_v28 }
  0x27   : > { %516 = vmatpush1.bf16.msra.mxu0 %v1236_v8 }
  0x28   : > { %517 = vmatprep.subr.bf16.mxu0 %v1344_v1 }
  0x29   : > { %1161 = vmatpush3.bf16.msra.mxu1 %v1270_v34 }
  0x2a   : > { %1162 = vmatprep.subr.bf16.mxu1 %v1345_v28 }
  0x2b   : > { %518 = vmatpush1.bf16.msra.mxu0 %v1237_v9 }
  0x2c   : > { %519 = vmatprep.subr.bf16.mxu0 %v1344_v1 }
  0x2d   : > { %1163 = vmatpush3.bf16.msra.mxu1 %v1271_v35 }
  0x2e   : > { %1168 = vmatprep.subr.bf16.mxu1 %v1345_v28 }
  0x2f   : > { %520 = vmatpush1.bf16.msra.mxu0 %v1238_v10 }
  0x30   : > { %521 = vmatprep.subr.bf16.mxu0 %v1344_v1 }
  0x33   : > { %522 = vmatpush1.bf16.msra.mxu0 %v1239_v11 }
  0x36   : > { %536 = vmatmul.mubr.bf16.vlgmr.msra.gmra.mrb[0].mxu0 %v1240_v12 }
  0x37   : > { %1098 = vmatprep.mubr.msk.bf16.mxu0 %vm478_vm0, %v1243_v13 }
  0x3e   : > { %544 = vmatmul.mubr.bf16.gmra.mrb[4].mxu0 %v1245_v14 }
  0x3f   : > { %1099 = vmatprep.mubr.msk.bf16.mxu0 %vm478_vm0, %v1246_v15 }
  0x46   : > { %552 = vmatmul.mubr.bf16.gmra.mrb[8].mxu0 %v1248_v16 }
  0x47   : > { %1100 = vmatprep.mubr.msk.bf16.mxu0 %vm478_vm0, %v1249_v17 }
  0x4e   : > { %560 = vmatmul.mubr.bf16.gmra.mrb[12].mxu0 %v1251_v18 }
  0x4f   : > { %1101 = vmatprep.mubr.msk.bf16.mxu0 %vm478_vm0, %v1252_v19 }
  0x56   : > { %568 = vmatmul.mubr.bf16.gmra.mrb[16].mxu0 %v1254_v20 }
  0x57   : > { %1102 = vmatprep.mubr.msk.bf16.mxu0 %vm478_vm0, %v1255_v21 }
  0x5e   : > { %576 = vmatmul.mubr.bf16.gmra.mrb[20].mxu0 %v1257_v22 }
  0x5f   : > { %1103 = vmatprep.mubr.msk.bf16.mxu0 %vm478_vm0, %v1258_v23 }
  0x66   : > { %584 = vmatmul.mubr.bf16.gmra.mrb[24].mxu0 %v1260_v24 }
  0x67   : > { %1104 = vmatprep.mubr.msk.bf16.mxu0 %vm478_vm0, %v1261_v25 }
  0x6e   : > { %592 = vmatmul.mubr.bf16.gmra.mrb[28].mxu0 %v1263_v26 }
 0x109   : > { %v537_v39 = vpop.f32.mrb[0].mxu0 }
 0x10a   : > { %v617_v42 = vadd.f32 %v1539_v38, %v537_v39  ;;  %v539_v43 = vpop.f32.mrb[1].mxu0 }
 0x10b   : > { %v540_v44 = vpop.f32.mrb[2].mxu0 }
 0x10c   : > { %v633_v45 = vmax.f32 %v617_v42, 0.0  ;;  %v618_v46 = vadd.f32 %v1539_v38, %v540_v44  ;;  %v542_v47 = vpop.f32.mrb[3].mxu0 }
 0x10e   : > { %v634_v50 = vmax.f32 %v618_v46, 0.0  ;;  %v653_v51 = vsel %vm1546_vm2, %v633_v45, 0.0 }
 0x110   : > { %v654_v52 = vsel %vm1550_vm3, %v634_v50, 0.0 }
 0x111   : > { %v669_v53 = vmax.f32 %v653_v51, %v654_v52  ;;  %v545_v54 = vpop.f32.mrb[4].mxu0 }
 0x112   : > { %v619_v55 = vadd.f32 %v1539_v38, %v545_v54  ;;  %v547_v56 = vpop.f32.mrb[5].mxu0 }
 0x113   : > { %v670_v57 = vrot.slane %v669_v53, 4  ;;  %v548_v58 = vpop.f32.mrb[6].mxu0 }
 0x114   : > { %v635_v59 = vmax.f32 %v619_v55, 0.0  ;;  %v620_v60 = vadd.f32 %v1539_v38, %v548_v58  ;;  %v550_v61 = vpop.f32.mrb[7].mxu0 }
 0x115   : > { %v671_v62 = vmax.f32 %v669_v53, %v670_v57 }
 0x116   : > { %v636_v63 = vmax.f32 %v620_v60, 0.0  ;;  %v655_v1 = vsel %vm1546_vm2, %v635_v59, 0.0 }
 0x117   : > { %v672_v0 = vrot.slane %v671_v62, 2 }
 0x118   : > { %v656_v2 = vsel %vm1550_vm3, %v636_v63, 0.0 }
 0x119   : > { %v673_v3 = vmax.f32 %v671_v62, %v672_v0  ;;  %v676_v4 = vmax.f32 %v655_v1, %v656_v2  ;;  %v553_v5 = vpop.f32.mrb[8].mxu0 }
 0x11a   : > { %v621_v6 = vadd.f32 %v1539_v38, %v553_v5  ;;  %v555_v7 = vpop.f32.mrb[9].mxu0 }
 0x11b   : > { %v677_v8 = vrot.slane %v676_v4, 4  ;;  %v556_v9 = vpop.f32.mrb[10].mxu0  ;;  %v674_v13 = vrot.slane %v673_v3, 1 }
 0x11c   : > { %v637_v10 = vmax.f32 %v621_v6, 0.0  ;;  %v622_v11 = vadd.f32 %v1539_v38, %v556_v9  ;;  %v558_v12 = vpop.f32.mrb[11].mxu0 }
 0x11d   : > { %v678_v14 = vmax.f32 %v676_v4, %v677_v8  ;;  %v675_v19 = vmax.f32 %v673_v3, %v674_v13 }
 0x11e   : > { %v638_v15 = vmax.f32 %v622_v11, 0.0  ;;  %v657_v17 = vsel %vm1546_vm2, %v637_v10, 0.0 }
 0x11f   : > { %v679_v16 = vrot.slane %v678_v14, 2  ;;  %v725_v32 = vpack.c.bf16 %v675_v19, %v675_v19 }
 0x120   : > { %v658_v18 = vsel %vm1550_vm3, %v638_v15, 0.0 }
 0x121   : > { %v680_v20 = vmax.f32 %v678_v14, %v679_v16  ;;  %v683_v21 = vmax.f32 %v657_v17, %v658_v18  ;;  %v561_v22 = vpop.f32.mrb[12].mxu0  ;;  %v764_v41 = vunpack.c.l.b16 %v725_v32 }
 0x122   : > { %v623_v23 = vadd.f32 %v1539_v38, %v561_v22  ;;  %v563_v24 = vpop.f32.mrb[13].mxu0 }
 0x123   : > { %v681_v25 = vrot.slane %v680_v20, 1  ;;  %v684_v26 = vrot.slane %v683_v21, 4  ;;  %v564_v27 = vpop.f32.mrb[14].mxu0 }
 0x124   : > { %v639_v29 = vmax.f32 %v623_v23, 0.0  ;;  %v624_v30 = vadd.f32 %v1539_v38, %v564_v27  ;;  %v566_v31 = vpop.f32.mrb[15].mxu0 }
 0x125   : > { %v682_v33 = vmax.f32 %v680_v20, %v681_v25  ;;  %v685_v34 = vmax.f32 %v683_v21, %v684_v26 }
 0x126   : > { %v640_v35 = vmax.f32 %v624_v30, 0.0  ;;  %v659_v39 = vsel %vm1546_vm2, %v639_v29, 0.0 }
 0x127   : > { %v726_v36 = vpack.c.bf16 %v682_v33, %v682_v33  ;;  %v686_v37 = vrot.slane %v685_v34, 2 }
 0x128   : > { %v660_v40 = vsel %vm1550_vm3, %v640_v35, 0.0 }
 0x129   : > { %v765_v42 = vunpack.c.l.b16 %v726_v36  ;;  %v687_v43 = vmax.f32 %v685_v34, %v686_v37  ;;  %v690_v44 = vmax.f32 %v659_v39, %v660_v40  ;;  %v569_v45 = vpop.f32.mrb[16].mxu0 }
 0x12a   : > { %v625_v46 = vadd.f32 %v1539_v38, %v569_v45  ;;  %v571_v47 = vpop.f32.mrb[17].mxu0 }
 0x12b   : > { %v773_v50 = vsel %vm772_vm4, %v765_v42, %v764_v41  ;;  %v688_v51 = vrot.slane %v687_v43, 1  ;;  %v691_v52 = vrot.slane %v690_v44, 4  ;;  %v572_v53 = vpop.f32.mrb[18].mxu0 }
 0x12c   : > { %v641_v54 = vmax.f32 %v625_v46, 0.0  ;;  %v626_v55 = vadd.f32 %v1539_v38, %v572_v53  ;;  %v574_v56 = vpop.f32.mrb[19].mxu0 }
 0x12d   : > { %v689_v57 = vmax.f32 %v687_v43, %v688_v51  ;;  %v692_v58 = vmax.f32 %v690_v44, %v691_v52 }
 0x12e   : > { %v642_v59 = vmax.f32 %v626_v55, 0.0  ;;  %v661_v62 = vsel %vm1546_vm2, %v641_v54, 0.0 }
 0x12f   : > { %v727_v60 = vpack.c.bf16 %v689_v57, %v689_v57  ;;  %v693_v61 = vrot.slane %v692_v58, 2 }
 0x130   : > { %v662_v63 = vsel %vm1550_vm3, %v642_v59, 0.0 }
 0x131   : > { %v766_v0 = vunpack.c.l.b16 %v727_v60  ;;  %v694_v1 = vmax.f32 %v692_v58, %v693_v61  ;;  %v697_v2 = vmax.f32 %v661_v62, %v662_v63  ;;  %v577_v3 = vpop.f32.mrb[20].mxu0 }
 0x132   : > { %v627_v4 = vadd.f32 %v1539_v38, %v577_v3  ;;  %v579_v5 = vpop.f32.mrb[21].mxu0 }
 0x133   : > { %v695_v6 = vrot.slane %v694_v1, 1  ;;  %v698_v7 = vrot.slane %v697_v2, 4  ;;  %v580_v8 = vpop.f32.mrb[22].mxu0  ;;  %v775_v9 = vsel %vm774_vm5, %v766_v0, %v773_v50 }
 0x134   : > { %v643_v10 = vmax.f32 %v627_v4, 0.0  ;;  %v628_v11 = vadd.f32 %v1539_v38, %v580_v8  ;;  %v582_v12 = vpop.f32.mrb[23].mxu0 }
 0x135   : > { %v696_v13 = vmax.f32 %v694_v1, %v695_v6  ;;  %v699_v14 = vmax.f32 %v697_v2, %v698_v7 }
 0x136   : > { %v644_v15 = vmax.f32 %v628_v11, 0.0  ;;  %v663_v18 = vsel %vm1546_vm2, %v643_v10, 0.0 }
 0x137   : > { %v728_v16 = vpack.c.bf16 %v696_v13, %v696_v13  ;;  %v700_v17 = vrot.slane %v699_v14, 2 }
 0x138   : > { %v664_v19 = vsel %vm1550_vm3, %v644_v15, 0.0  ;;  %v1272_v15 = vld [vmem:[%s1692_s6] sm:$0xff]  }
 0x139   : > { %v767_v20 = vunpack.c.l.b16 %v728_v16  ;;  %v701_v21 = vmax.f32 %v699_v14, %v700_v17  ;;  %v704_v22 = vmax.f32 %v663_v18, %v664_v19  ;;  %v585_v23 = vpop.f32.mrb[24].mxu0  ;;  %v1273_v17 = vld [vmem:[%s1692_s6 + $0x8] sm:$0xff]   ;;  %v1274_v18 = vld [vmem:[%s1692_s6 + $0x10] sm:$0xff]   ;;  %v1275_v19 = vld [vmem:[%s1692_s6 + $0x18] sm:$0xff]  }
 0x13a   : > { %v629_v24 = vadd.f32 %v1539_v38, %v585_v23  ;;  %v587_v25 = vpop.f32.mrb[25].mxu0  ;;  %v1279_v23 = vld [vmem:[%s1692_s6 + $0x38] sm:$0xff]  }
 0x13b   : > { %v702_v26 = vrot.slane %v701_v21, 1  ;;  %v705_v27 = vrot.slane %v704_v22, 4  ;;  %v588_v29 = vpop.f32.mrb[26].mxu0  ;;  %v777_v30 = vsel %vm776_vm6, %v767_v20, %v775_v9  ;;  %v1276_v20 = vld [vmem:[%s1692_s6 + $0x20] sm:$0xff]  }
 0x13c   : > { %v645_v31 = vmax.f32 %v629_v24, 0.0  ;;  %v630_v32 = vadd.f32 %v1539_v38, %v588_v29  ;;  %v590_v33 = vpop.f32.mrb[27].mxu0  ;;  %v1107_v24 = vld [vmem:[%s1691_s5] ss:$0 sm:$0xff] }
 0x13d   : > { %v703_v34 = vmax.f32 %v701_v21, %v702_v26  ;;  %v706_v35 = vmax.f32 %v704_v22, %v705_v27  ;;  %v1277_v21 = vld [vmem:[%s1692_s6 + $0x28] sm:$0xff]   ;;  %v1278_v22 = vld [vmem:[%s1692_s6 + $0x30] sm:$0xff]  }
 0x13e   : > { %v646_v36 = vmax.f32 %v630_v32, 0.0  ;;  %v665_v40 = vsel %vm1546_vm2, %v645_v31, 0.0 }
 0x13f   : > { %v729_v37 = vpack.c.bf16 %v703_v34, %v703_v34  ;;  %v707_v39 = vrot.slane %v706_v35, 2 }
 0x140   : > { %v666_v41 = vsel %vm1550_vm3, %v646_v36, 0.0 }
 0x141   : > { %v768_v42 = vunpack.c.l.b16 %v729_v37  ;;  %v708_v43 = vmax.f32 %v706_v35, %v707_v39  ;;  %v711_v44 = vmax.f32 %v665_v40, %v666_v41  ;;  %v593_v45 = vpop.f32.mrb[28].mxu0 }
 0x142   : > { %v631_v46 = vadd.f32 %v1539_v38, %v593_v45  ;;  %v595_v47 = vpop.f32.mrb[29].mxu0 }
 0x143   : > { %v709_v50 = vrot.slane %v708_v43, 1  ;;  %v712_v51 = vrot.slane %v711_v44, 4  ;;  %v596_v52 = vpop.f32.mrb[30].mxu0  ;;  %v779_v53 = vsel %vm778_vm7, %v768_v42, %v777_v30 }
 0x144   : > { %v647_v54 = vmax.f32 %v631_v46, 0.0  ;;  %v632_v55 = vadd.f32 %v1539_v38, %v596_v52  ;;  %v598_v56 = vpop.f32.mrb[31].mxu0 }
 0x145   : > { %v710_v57 = vmax.f32 %v708_v43, %v709_v50  ;;  %v713_v58 = vmax.f32 %v711_v44, %v712_v51 }
 0x146   : > { %v648_v59 = vmax.f32 %v632_v55, 0.0  ;;  %v667_v62 = vsel %vm1546_vm2, %v647_v54, 0.0 }
 0x147   : > { %v730_v60 = vpack.c.bf16 %v710_v57, %v710_v57  ;;  %v714_v61 = vrot.slane %v713_v58, 2 }
 0x148   : > { %v668_v63 = vsel %vm1550_vm3, %v648_v59, 0.0 }
 0x149   : > { %v769_v0 = vunpack.c.l.b16 %v730_v60  ;;  %v715_v1 = vmax.f32 %v713_v58, %v714_v61  ;;  %v718_v2 = vmax.f32 %v667_v62, %v668_v63 }
 0x14b   : > { %v716_v3 = vrot.slane %v715_v1, 1  ;;  %v719_v4 = vrot.slane %v718_v2, 4  ;;  %v781_v5 = vsel %vm780_vm8, %v769_v0, %v779_v53 }
 0x14d   : > { %v717_v38 = vmax.f32 %v715_v1, %v716_v3  ;;  %v720_v6 = vmax.f32 %v718_v2, %v719_v4 }
 0x14f   : > { %v731_v7 = vpack.c.bf16 %v717_v38, %v717_v38  ;;  %v721_v8 = vrot.slane %v720_v6, 2 }
 0x151   : > { %v722_v9 = vmax.f32 %v720_v6, %v721_v8  ;;  %v770_v10 = vunpack.c.l.b16 %v731_v7 }
 0x153   : > { %v723_v11 = vrot.slane %v722_v9, 1  ;;  %v783_v48 = vsel %vm782_vm9, %v770_v10, %v781_v5 }
 0x155   : > { %v724_v12 = vmax.f32 %v722_v9, %v723_v11 }
 0x157   : > { %v732_v13 = vpack.c.bf16 %v724_v12, %v724_v12 }
 0x159   : > { %v771_v49 = vunpack.c.l.b16 %v732_v13 }
 0x15b   : > { %v785_v14 = vsel %vm784_vm10, %v771_v49, %v783_v48 }
 0x15c   : > { %v786_v16 = vpack.c.b16 %v785_v14, %v785_v14 }
 0x15e   : > { %1165 = vmatmul.mubr.bf16.vlgmr.msra.gmra.mrb[0].mxu1 %v786_v16 }
 0x15f   : > { %1169 = vmatpush3.bf16.msra.mxu1 %v1272_v15  ;;  %1184 = vmatprep.mubr.msk.bf16.mxu1 %vm1346_vm1, %v1345_v28 }
 0x160   : > { %1170 = vmatprep.subr.bf16.mxu1 %v1345_v28 }
 0x163   : > { %1171 = vmatpush3.bf16.msra.mxu1 %v1273_v17 }
 0x164   : > { %1172 = vmatprep.subr.bf16.mxu1 %v1345_v28 }
 0x167   : > { %1173 = vmatpush3.bf16.msra.mxu1 %v1274_v18 }
 0x168   : > { %1174 = vmatprep.subr.bf16.mxu1 %v1345_v28 }
 0x16b   : > { %1175 = vmatpush3.bf16.msra.mxu1 %v1275_v19 }
 0x16c   : > { %1176 = vmatprep.subr.bf16.mxu1 %v1345_v28 }
 0x16f   : > { %1177 = vmatpush3.bf16.msra.mxu1 %v1276_v20 }
 0x170   : > { %1178 = vmatprep.subr.bf16.mxu1 %v1345_v28 }
 0x173   : > { %1179 = vmatpush3.bf16.msra.mxu1 %v1277_v21 }
 0x174   : > { %1180 = vmatprep.subr.bf16.mxu1 %v1345_v28 }
 0x177   : > { %1181 = vmatpush3.bf16.msra.mxu1 %v1278_v22 }
 0x178   : > { %1182 = vmatprep.subr.bf16.mxu1 %v1345_v28  ;;  %v1116_v28 = vld [vmem:[%s1693_s7] ss:$0 sm:$0xff] }
 0x17b   : > { %1183 = vmatpush3.bf16.msra.mxu1 %v1279_v23 }
 0x231   : > { %v870_v25 = vpop.f32.mrb[0].mxu1 }
 0x232   : > { %v871_v26 = vadd.f32 %v1107_v24, %v870_v25  ;;  %v1166_v27 = vpop.f32.mrb[1].mxu1 }
 0x233   : > { %v873_v29 = vpop.f32.mrb[2].mxu1 }
 0x234   : > { %v876_v30 = vmax.f32 %v871_v26, 0.0  ;;  %v1167_v31 = vpop.f32.mrb[3].mxu1 }
 0x236   : > { %v877_v32 = vpack.c.bf16 %v876_v30, %v876_v30 }
 0x238   : > { %1185 = vmatmul.mubr.bf16.vlgmr.msra.gmra.mrb[4].mxu1 %v877_v32 }
 0x30b   : > { %v983_v33 = vpop.f32.mrb[4].mxu1 }
 0x30c   : > { %v984_v34 = vadd.f32 %v1116_v28, %v983_v33  ;;  %v1186_v35 = vpop.f32.mrb[5].mxu1 }
 0x30d   : > { %v986_v36 = vpop.f32.mrb[6].mxu1 }
 0x30e   : > { %989 = vst [vmem:[%s301_s21] sm:$0xff] %v984_v34  ;;  %v1187_v37 = vpop.f32.mrb[7].mxu1 }
 0x30f   : > { %1293 = shalt.err (!%p1290_p3)
}
 0x310   : > { %s1294_s13 = scalar_lea.hbm %s1644_s24, 128  ;;  %s1298_s20 = scalar_lea.hbm %s1694_s8, 256 }
 0x311   : > { %p1295_p4 = scmp.ne.s32.totalorder %s1644_s24, %s1294_s13  ;;  %p1299_p9 = scmp.lt.u32.totalorder %s1644_s24, %s1694_s8 }
 0x312   : > { %p1300_p10 = scmp.lt.u32.totalorder %s1298_s20, %s1294_s13  ;;  %p1302_p12 = scmp.lt.u32.totalorder %s1294_s13, %s1644_s24 }
 0x313   : > { %p1296_p7 = pnand %p1295_p4, %p1431_p5 }
 0x314   : > { %p1301_p11 = por %p1300_p10, %p1299_p9 }
 0x315   : > { %p1297_p8 = pneg %p1296_p7 }
 0x316   : > { %p1303_p13 = por %p1302_p12, %p1301_p11 }
 0x318   : > { %p1304_p0 = pnand %p1303_p13, %p1297_p8 }
 0x31a   : > { %1307 = shalt.err (!%p1304_p0)
}
 0x31b   : > { %1188 = dma.vmem_to_hbm [thread:$0]  (%p1431_p5), %s1646_s10, 128, %s1644_s24, %s991_s25  }
 0x31c PF: > { %p1194_p1 = scmp.ge.s32.totalorder %s1342_s30, 2  ;;  %s1016_s23 = sand.u32 1, %s1330_s27  }
 0x31d   : > { %s1017_s9 = scalar_lea.sflag [#allocation3], %s1016_s23 }
 0x31e   : > { %p1191_p2 = pnand %p1194_p1, %p1435_p6 }
 0x320   : > { %1325 = dma.done.wait (!%p1191_p2), %s1017_s9, 128  }
 0x321   : > { %1327 = vsyncadd (!%p1191_p2), %s1017_s9, 4294967168  ;;  %p18_p3 = scmp.ge.s32.totalorder %s1418_s11, 4   ;;  %s1701_s27 = smov %s1334_s28 }
 0x322   : > { %s1702_s28 = smov %s1338_s29  ;;  %s1703_s29 = smov %s1429_s14 }
 0x323   : > { %s1704_s30 = smov %s1418_s11  ;;  %20 = sbr.rel (!%p18_p3) target bundleno = 3 (0x3), region = 87 }
 0x32a   :  { %1022 = vsyncpa [#allocation3], 1 }
 0x32b   :  { %1024 = vsyncpa [#allocation3 + $0x1], 1 }

// kernel: tpu_custom_call.1
= control target key start
LH: loop header
LB: loop body
LE: loop exit
PB: predicated region body
PF: predicated region fallthrough
CT: control target
= control target key end

     0   :  { %13 = vsyncpa [#allocation3], 0  ;;  %s1686_s0 = inlined_call_operand.vmem [shape: bf16[256,160], index: 0, kind: input, shape index: {}]   ;;  %s1687_s1 = inlined_call_operand.vmem [shape: bf16[160,128], index: 1, kind: input, shape index: {}]   ;;  %s1688_s2 = inlined_call_operand.vmem [shape: f32[1,1,128], index: 2, kind: input, shape index: {}]   ;;  %s1689_s3 = inlined_call_operand.vmem [shape: s32[1,1,128], index: 3, kind: input, shape index: {}]   ;;  %s1690_s4 = inlined_call_operand.vmem [shape: bf16[128,128], index: 4, kind: input, shape index: {}]   ;;  %s1691_s5 = inlined_call_operand.vmem [shape: f32[1,128], index: 5, kind: input, shape index: {}]   ;;  %s1692_s6 = inlined_call_operand.vmem [shape: bf16[128,128], index: 6, kind: input, shape index: {}]   ;;  %s1693_s7 = inlined_call_operand.vmem [shape: f32[1,128], index: 7, kind: input, shape index: {}]   ;;  %s1694_s8 = inlined_call_operand.hbm [shape: f32[16,128], index: 8, kind: output, shape index: {}]  }
   0x1   :  { %15 = vsyncpa [#allocation3 + $0x1], 0  ;;  %s1393_s27 = smov 0   ;;  %s1395_s28 = smov 0  }
   0x2   :  { %s1397_s29 = smov 0   ;;  %s1399_s30 = smov 0  }
   0x3 LB: > { %s1414_s9 = sadd.s32 4294967295, %s1342_s30   ;;  %s1063_s10 = sadd.s32 4294967294, %s1342_s30   ;;  %s1342_s30 = sphi %s1399_s30, %s1704_s30   ;;  %s1338_s29 = sphi %s1397_s29, %s1703_s29   ;;  %s1334_s28 = sphi %s1395_s28, %s1702_s28   ;;  %s1330_s27 = sphi %s1393_s27, %s1701_s27  }
   0x4   : > { %s1418_s11 = sadd.s32 1, %s1342_s30   ;;  %s201_s12 = sadd.s32 1, %s1338_s29 }
   0x5   : > { %s198_s13 = ssub.s32 %s1342_s30, %s1418_s11  ;;  %p211_p0 = scmp.ne.s32.totalorder %s1338_s29, %s1334_s28 }
   0x6   : > { %p199_p1 = scmp.eq.s32.totalorder %s198_s13, 0  ;;  %p212_p2 = scmp.eq.s32.totalorder %s1414_s9, 1 }
   0x7   : > { %p217_p3 = scmp.ne.s32.totalorder %s1334_s28, %s1330_s27  ;;  %p218_p4 = scmp.eq.s32.totalorder %s1063_s10, 1 }
   0x8   : > { %s1429_s14 = scalar_select %p199_p1, %s1338_s29, %s201_s12  }
   0x9   : > { %p1431_p5 = por %p212_p2, %p211_p0  ;;  %p1435_p6 = por %p218_p4, %p217_p3 }
   0xa   : > { %p1066_p7 = scmp.ge.s32.totalorder %s1342_s30, 1  ;;  %p267_p8 = scmp.lt.s32.totalorder %s1342_s30, 3 }
   0xc   : > { %p268_p9 = pnand %p1066_p7, %p267_p8 }
   0xd   : > { %v1230_v0 = vld [vmem:[%s1687_s1] sm:$0xff] (!%p268_p9)   ;;  %v1344_v1 = vmov (!%p268_p9), 0   ;;  %s1068_s19 = sshll.u32 (!%p268_p9), %s1414_s9, 4  ;;  %v1231_v2 = vld [vmem:[%s1687_s1 + $0x8] sm:$0xff] (!%p268_p9)   ;;  %v1232_v3 = vld [vmem:[%s1687_s1 + $0x10] sm:$0xff] (!%p268_p9)   ;;  %vm478_vm0 = vcmask (!%p268_p9), 261120   ;;  %v600_v36 = vlaneseq (!%p268_p9) }
   0xe   : > { %271 = sbr.rel (%p268_p9) target bundleno = 796 (0x31c), region = 52  ;;  %503 = vmatprep.subr.bf16.mxu0 (!%p268_p9), %v1344_v1  ;;  %p303_p10 = scmp.lt.s32.totalorder (!%p268_p9), %s1068_s19, 31  ;;  %v1233_v4 = vld [vmem:[%s1687_s1 + $0x18] sm:$0xff] (!%p268_p9)   ;;  %v1234_v6 = vld [vmem:[%s1687_s1 + $0x20] sm:$0xff] (!%p268_p9)   ;;  %v1235_v7 = vld [vmem:[%s1687_s1 + $0x28] sm:$0xff] (!%p268_p9)   ;;  %v1345_v28 = vmov (!%p268_p9), 0.0  }
   0xf   : > { %504 = vmatpush1.bf16.msra.mxu0 (!%p268_p9), %v1230_v0  ;;  %v1236_v8 = vld [vmem:[%s1687_s1 + $0x30] sm:$0xff] (!%p268_p9)   ;;  %v1237_v9 = vld [vmem:[%s1687_s1 + $0x38] sm:$0xff] (!%p268_p9)   ;;  %v1238_v10 = vld [vmem:[%s1687_s1 + $0x40] sm:$0xff] (!%p268_p9)   ;;  %1148 = vmatprep.subr.bf16.mxu1 (!%p268_p9), %v1345_v28  ;;  %vm1346_vm1 = vmmov (!%p268_p9), 0   ;;  %v601_v37 = vshrl.u32 (!%p268_p9), %v600_v36, 7  ;;  %vm772_vm4 = vcmask (!%p268_p9), 1041409  }
  0x10   : > { %505 = vmatprep.subr.bf16.mxu0 (!%p268_p9), %v1344_v1  ;;  %v1239_v11 = vld [vmem:[%s1687_s1 + $0x48] sm:$0xff] (!%p268_p9)   ;;  %v1264_v27 = vld [vmem:[%s1690_s4] sm:$0xff] (!%p268_p9)   ;;  %v1266_v30 = vld [vmem:[%s1690_s4 + $0x10] sm:$0xff] (!%p268_p9)   ;;  %1164 = vmatprep.mubr.msk.bf16.mxu1 (!%p268_p9), %vm1346_vm1, %v1345_v28  ;;  %vm774_vm5 = vcmask (!%p268_p9), 1042434   ;;  %vm776_vm6 = vcmask (!%p268_p9), 1043459   ;;  %vm778_vm7 = vcmask (!%p268_p9), 1044484  }
  0x11   : > { %1149 = vmatpush3.bf16.msra.mxu1 (!%p268_p9), %v1264_v27  ;;  %v1265_v29 = vld [vmem:[%s1690_s4 + $0x8] sm:$0xff] (!%p268_p9)   ;;  %v1267_v31 = vld [vmem:[%s1690_s4 + $0x18] sm:$0xff] (!%p268_p9)   ;;  %v1268_v32 = vld [vmem:[%s1690_s4 + $0x20] sm:$0xff] (!%p268_p9)   ;;  %v602_v40 = vadd.s32 (!%p268_p9), 8, %v601_v37  ;;  %vm780_vm8 = vcmask (!%p268_p9), 1045509   ;;  %vm782_vm9 = vcmask (!%p268_p9), 1046534  }
  0x12   : > { %1150 = vmatprep.subr.bf16.mxu1 (!%p268_p9), %v1345_v28  ;;  %v1269_v33 = vld [vmem:[%s1690_s4 + $0x28] sm:$0xff] (!%p268_p9)   ;;  %v1270_v34 = vld [vmem:[%s1690_s4 + $0x30] sm:$0xff] (!%p268_p9)   ;;  %v1271_v35 = vld [vmem:[%s1690_s4 + $0x38] sm:$0xff] (!%p268_p9)   ;;  %vm784_vm10 = vcmask (!%p268_p9), 1047559   ;;  %s299_s13 = sand.u32 (!%p268_p9), 1, %s1334_s28   ;;  %s1126_s20 = sshll.u32 (!%p268_p9), %s1414_s9, 7 }
  0x13   : > { %506 = vmatpush1.bf16.msra.mxu0 (!%p268_p9), %v1231_v2  ;;  %v1539_v38 = vld [vmem:[%s1688_s2] ss:$0 sm:$0xff] (!%p268_p9)  ;;  %s1067_s17 = sshll.u32 (!%p268_p9), %s299_s13, 3  ;;  %s991_s25 = scalar_lea.sflag (!%p268_p9), [#allocation3], %s299_s13 }
  0x14   : > { %507 = vmatprep.subr.bf16.mxu0 (!%p268_p9), %v1344_v1  ;;  %v1105_v41 = vld [vmem:[%s1689_s3] ss:$0 sm:$0xff] (!%p268_p9)  ;;  %s301_s21 = scalar_lea.vmem (!%p268_p9), [#allocation2], %s1067_s17  ;;  %s1347_s26 = smov (!%p268_p9), [#allocation2]  }
  0x15   : > { %s1706_s19 = smov (!%p303_p10, %s1068_s19), 31  ;;  %1151 = vmatpush3.bf16.msra.mxu1 %v1265_v29  ;;  %vm1546_vm2 = vcmp.lt.s32.totalorder %v601_v37, %v1105_v41  ;;  %vm1550_vm3 = vcmp.lt.s32.totalorder %v602_v40, %v1105_v41  ;;  %s1284_s12 = sshll.u32 %s1347_s26, 4  ;;  %s1285_s12 = int_to_ptr.vmem [resolvable:$false] %s1284_s12 }
  0x16   : > { %s1129_s24 = sshll.u32 %s1706_s19, 3  ;;  %1152 = vmatprep.subr.bf16.mxu1 %v1345_v28  ;;  %s1286_s17 = scalar_lea.vmem %s1285_s12, 256 }
  0x17   : > { %s1454_s10 = scalar_lea.vmem %s1686_s0, %s1129_s24  ;;  %508 = vmatpush1.bf16.msra.mxu0 %v1232_v3  ;;  %s1644_s24 = scalar_lea.hbm %s1694_s8, %s1126_s20 }
  0x18   : > { %509 = vmatprep.subr.bf16.mxu0 %v1344_v1  ;;  %v1242_v5 = vld [vmem:[%s1454_s10 + $0x4] ss:$8 sps:$4 sm:$0xff]   ;;  %v1240_v12 = vld [vmem:[%s1454_s10] ss:$8 sps:$4 sm:$0xff]   ;;  %v1243_v13 = vld [vmem:[%s1454_s10 + $0x14] ss:$8 sps:$4 sm:$0xff]  }
  0x19   : > { %1097 = vmatprep.mubr.msk.bf16.mxu0 %vm478_vm0, %v1242_v5  ;;  %v1245_v14 = vld [vmem:[%s1454_s10 + $0x10] ss:$8 sps:$4 sm:$0xff]   ;;  %v1246_v15 = vld [vmem:[%s1454_s10 + $0x24] ss:$8 sps:$4 sm:$0xff]   ;;  %v1248_v16 = vld [vmem:[%s1454_s10 + $0x20] ss:$8 sps:$4 sm:$0xff]   ;;  %1153 = vmatpush3.bf16.msra.mxu1 %v1266_v30 }
  0x1a   : > { %v1249_v17 = vld [vmem:[%s1454_s10 + $0x34] ss:$8 sps:$4 sm:$0xff]   ;;  %v1251_v18 = vld [vmem:[%s1454_s10 + $0x30] ss:$8 sps:$4 sm:$0xff]   ;;  %v1252_v19 = vld [vmem:[%s1454_s10 + $0x44] ss:$8 sps:$4 sm:$0xff]   ;;  %1154 = vmatprep.subr.bf16.mxu1 %v1345_v28 }
  0x1b   : > { %510 = vmatpush1.bf16.msra.mxu0 %v1233_v4  ;;  %v1254_v20 = vld [vmem:[%s1454_s10 + $0x40] ss:$8 sps:$4 sm:$0xff]   ;;  %v1255_v21 = vld [vmem:[%s1454_s10 + $0x54] ss:$8 sps:$4 sm:$0xff]   ;;  %v1257_v22 = vld [vmem:[%s1454_s10 + $0x50] ss:$8 sps:$4 sm:$0xff]  }
  0x1c   : > { %511 = vmatprep.subr.bf16.mxu0 %v1344_v1  ;;  %v1258_v23 = vld [vmem:[%s1454_s10 + $0x64] ss:$8 sps:$4 sm:$0xff]   ;;  %v1260_v24 = vld [vmem:[%s1454_s10 + $0x60] ss:$8 sps:$4 sm:$0xff]   ;;  %v1261_v25 = vld [vmem:[%s1454_s10 + $0x74] ss:$8 sps:$4 sm:$0xff]  }
  0x1d   : > { %v1263_v26 = vld [vmem:[%s1454_s10 + $0x70] ss:$8 sps:$4 sm:$0xff]   ;;  %1155 = vmatpush3.bf16.msra.mxu1 %v1267_v31  ;;  %s1004_s10 = sshll.u32 %s301_s21, 4  ;;  %s1646_s10 = int_to_ptr.vmem [resolvable:$true] %s1004_s10 }
  0x1e   : > { %1156 = vmatprep.subr.bf16.mxu1 %v1345_v28  ;;  %s1280_s9 = scalar_lea.vmem %s1646_s10, 128  ;;  %p1287_p0 = scmp.lt.s32.totalorder %s1646_s10, %s1285_s12 }
  0x1f   : > { %512 = vmatpush1.bf16.msra.mxu0 %v1234_v6  ;;  %p1281_p11 = scmp.ne.s32.totalorder %s1646_s10, %s1280_s9  ;;  %p1288_p1 = scmp.lt.s32.totalorder %s1286_s17, %s1280_s9 }
  0x20   : > { %513 = vmatprep.subr.bf16.mxu0 %v1344_v1 }
  0x21   : > { %1157 = vmatpush3.bf16.msra.mxu1 %v1268_v32  ;;  %p1282_p12 = pnand %p1281_p11, %p1431_p5  ;;  %p1289_p2 = por %p1288_p1, %p1287_p0 }
  0x22   : > { %1158 = vmatprep.subr.bf16.mxu1 %v1345_v28 }
  0x23   : > { %514 = vmatpush1.bf16.msra.mxu0 %v1235_v7  ;;  %p1283_p13 = pneg %p1282_p12 }
  0x24   : > { %515 = vmatprep.subr.bf16.mxu0 %v1344_v1 }
  0x25   : > { %1159 = vmatpush3.bf16.msra.mxu1 %v1269_v33  ;;  %p1290_p3 = pnand %p1289_p2, %p1283_p13 }
  0x26   : > { %1160 = vmatprep.subr.bf16.mxu1 %v1345_v28 }
  0x27   : > { %516 = vmatpush1.bf16.msra.mxu0 %v1236_v8 }
  0x28   : > { %517 = vmatprep.subr.bf16.mxu0 %v1344_v1 }
  0x29   : > { %1161 = vmatpush3.bf16.msra.mxu1 %v1270_v34 }
  0x2a   : > { %1162 = vmatprep.subr.bf16.mxu1 %v1345_v28 }
  0x2b   : > { %518 = vmatpush1.bf16.msra.mxu0 %v1237_v9 }
  0x2c   : > { %519 = vmatprep.subr.bf16.mxu0 %v1344_v1 }
  0x2d   : > { %1163 = vmatpush3.bf16.msra.mxu1 %v1271_v35 }
  0x2e   : > { %1168 = vmatprep.subr.bf16.mxu1 %v1345_v28 }
  0x2f   : > { %520 = vmatpush1.bf16.msra.mxu0 %v1238_v10 }
  0x30   : > { %521 = vmatprep.subr.bf16.mxu0 %v1344_v1 }
  0x33   : > { %522 = vmatpush1.bf16.msra.mxu0 %v1239_v11 }
  0x36   : > { %536 = vmatmul.mubr.bf16.vlgmr.msra.gmra.mrb[0].mxu0 %v1240_v12 }
  0x37   : > { %1098 = vmatprep.mubr.msk.bf16.mxu0 %vm478_vm0, %v1243_v13 }
  0x3e   : > { %544 = vmatmul.mubr.bf16.gmra.mrb[4].mxu0 %v1245_v14 }
  0x3f   : > { %1099 = vmatprep.mubr.msk.bf16.mxu0 %vm478_vm0, %v1246_v15 }
  0x46   : > { %552 = vmatmul.mubr.bf16.gmra.mrb[8].mxu0 %v1248_v16 }
  0x47   : > { %1100 = vmatprep.mubr.msk.bf16.mxu0 %vm478_vm0, %v1249_v17 }
  0x4e   : > { %560 = vmatmul.mubr.bf16.gmra.mrb[12].mxu0 %v1251_v18 }
  0x4f   : > { %1101 = vmatprep.mubr.msk.bf16.mxu0 %vm478_vm0, %v1252_v19 }
  0x56   : > { %568 = vmatmul.mubr.bf16.gmra.mrb[16].mxu0 %v1254_v20 }
  0x57   : > { %1102 = vmatprep.mubr.msk.bf16.mxu0 %vm478_vm0, %v1255_v21 }
  0x5e   : > { %576 = vmatmul.mubr.bf16.gmra.mrb[20].mxu0 %v1257_v22 }
  0x5f   : > { %1103 = vmatprep.mubr.msk.bf16.mxu0 %vm478_vm0, %v1258_v23 }
  0x66   : > { %584 = vmatmul.mubr.bf16.gmra.mrb[24].mxu0 %v1260_v24 }
  0x67   : > { %1104 = vmatprep.mubr.msk.bf16.mxu0 %vm478_vm0, %v1261_v25 }
  0x6e   : > { %592 = vmatmul.mubr.bf16.gmra.mrb[28].mxu0 %v1263_v26 }
 0x109   : > { %v537_v39 = vpop.f32.mrb[0].mxu0 }
 0x10a   : > { %v617_v42 = vadd.f32 %v1539_v38, %v537_v39  ;;  %v539_v43 = vpop.f32.mrb[1].mxu0 }
 0x10b   : > { %v540_v44 = vpop.f32.mrb[2].mxu0 }
 0x10c   : > { %v633_v45 = vmax.f32 %v617_v42, 0.0  ;;  %v618_v46 = vadd.f32 %v1539_v38, %v540_v44  ;;  %v542_v47 = vpop.f32.mrb[3].mxu0 }
 0x10e   : > { %v634_v50 = vmax.f32 %v618_v46, 0.0  ;;  %v653_v51 = vsel %vm1546_vm2, %v633_v45, 0.0 }
 0x110   : > { %v654_v52 = vsel %vm1550_vm3, %v634_v50, 0.0 }
 0x111   : > { %v669_v53 = vmax.f32 %v653_v51, %v654_v52  ;;  %v545_v54 = vpop.f32.mrb[4].mxu0 }
 0x112   : > { %v619_v55 = vadd.f32 %v1539_v38, %v545_v54  ;;  %v547_v56 = vpop.f32.mrb[5].mxu0 }
 0x113   : > { %v670_v57 = vrot.slane %v669_v53, 4  ;;  %v548_v58 = vpop.f32.mrb[6].mxu0 }
 0x114   : > { %v635_v59 = vmax.f32 %v619_v55, 0.0  ;;  %v620_v60 = vadd.f32 %v1539_v38, %v548_v58  ;;  %v550_v61 = vpop.f32.mrb[7].mxu0 }
 0x115   : > { %v671_v62 = vmax.f32 %v669_v53, %v670_v57 }
 0x116   : > { %v636_v63 = vmax.f32 %v620_v60, 0.0  ;;  %v655_v1 = vsel %vm1546_vm2, %v635_v59, 0.0 }
 0x117   : > { %v672_v0 = vrot.slane %v671_v62, 2 }
 0x118   : > { %v656_v2 = vsel %vm1550_vm3, %v636_v63, 0.0 }
 0x119   : > { %v673_v3 = vmax.f32 %v671_v62, %v672_v0  ;;  %v676_v4 = vmax.f32 %v655_v1, %v656_v2  ;;  %v553_v5 = vpop.f32.mrb[8].mxu0 }
 0x11a   : > { %v621_v6 = vadd.f32 %v1539_v38, %v553_v5  ;;  %v555_v7 = vpop.f32.mrb[9].mxu0 }
 0x11b   : > { %v677_v8 = vrot.slane %v676_v4, 4  ;;  %v556_v9 = vpop.f32.mrb[10].mxu0  ;;  %v674_v13 = vrot.slane %v673_v3, 1 }
 0x11c   : > { %v637_v10 = vmax.f32 %v621_v6, 0.0  ;;  %v622_v11 = vadd.f32 %v1539_v38, %v556_v9  ;;  %v558_v12 = vpop.f32.mrb[11].mxu0 }
 0x11d   : > { %v678_v14 = vmax.f32 %v676_v4, %v677_v8  ;;  %v675_v19 = vmax.f32 %v673_v3, %v674_v13 }
 0x11e   : > { %v638_v15 = vmax.f32 %v622_v11, 0.0  ;;  %v657_v17 = vsel %vm1546_vm2, %v637_v10, 0.0 }
 0x11f   : > { %v679_v16 = vrot.slane %v678_v14, 2  ;;  %v725_v32 = vpack.c.bf16 %v675_v19, %v675_v19 }
 0x120   : > { %v658_v18 = vsel %vm1550_vm3, %v638_v15, 0.0 }
 0x121   : > { %v680_v20 = vmax.f32 %v678_v14, %v679_v16  ;;  %v683_v21 = vmax.f32 %v657_v17, %v658_v18  ;;  %v561_v22 = vpop.f32.mrb[12].mxu0  ;;  %v764_v41 = vunpack.c.l.b16 %v725_v32 }
 0x122   : > { %v623_v23 = vadd.f32 %v1539_v38, %v561_v22  ;;  %v563_v24 = vpop.f32.mrb[13].mxu0 }
 0x123   : > { %v681_v25 = vrot.slane %v680_v20, 1  ;;  %v684_v26 = vrot.slane %v683_v21, 4  ;;  %v564_v27 = vpop.f32.mrb[14].mxu0 }
 0x124   : > { %v639_v29 = vmax.f32 %v623_v23, 0.0  ;;  %v624_v30 = vadd.f32 %v1539_v38, %v564_v27  ;;  %v566_v31 = vpop.f32.mrb[15].mxu0 }
 0x125   : > { %v682_v33 = vmax.f32 %v680_v20, %v681_v25  ;;  %v685_v34 = vmax.f32 %v683_v21, %v684_v26 }
 0x126   : > { %v640_v35 = vmax.f32 %v624_v30, 0.0  ;;  %v659_v39 = vsel %vm1546_vm2, %v639_v29, 0.0 }
 0x127   : > { %v726_v36 = vpack.c.bf16 %v682_v33, %v682_v33  ;;  %v686_v37 = vrot.slane %v685_v34, 2 }
 0x128   : > { %v660_v40 = vsel %vm1550_vm3, %v640_v35, 0.0 }
 0x129   : > { %v765_v42 = vunpack.c.l.b16 %v726_v36  ;;  %v687_v43 = vmax.f32 %v685_v34, %v686_v37  ;;  %v690_v44 = vmax.f32 %v659_v39, %v660_v40  ;;  %v569_v45 = vpop.f32.mrb[16].mxu0 }
 0x12a   : > { %v625_v46 = vadd.f32 %v1539_v38, %v569_v45  ;;  %v571_v47 = vpop.f32.mrb[17].mxu0 }
 0x12b   : > { %v773_v50 = vsel %vm772_vm4, %v765_v42, %v764_v41  ;;  %v688_v51 = vrot.slane %v687_v43, 1  ;;  %v691_v52 = vrot.slane %v690_v44, 4  ;;  %v572_v53 = vpop.f32.mrb[18].mxu0 }
 0x12c   : > { %v641_v54 = vmax.f32 %v625_v46, 0.0  ;;  %v626_v55 = vadd.f32 %v1539_v38, %v572_v53  ;;  %v574_v56 = vpop.f32.mrb[19].mxu0 }
 0x12d   : > { %v689_v57 = vmax.f32 %v687_v43, %v688_v51  ;;  %v692_v58 = vmax.f32 %v690_v44, %v691_v52 }
 0x12e   : > { %v642_v59 = vmax.f32 %v626_v55, 0.0  ;;  %v661_v62 = vsel %vm1546_vm2, %v641_v54, 0.0 }
 0x12f   : > { %v727_v60 = vpack.c.bf16 %v689_v57, %v689_v57  ;;  %v693_v61 = vrot.slane %v692_v58, 2 }
 0x130   : > { %v662_v63 = vsel %vm1550_vm3, %v642_v59, 0.0 }
 0x131   : > { %v766_v0 = vunpack.c.l.b16 %v727_v60  ;;  %v694_v1 = vmax.f32 %v692_v58, %v693_v61  ;;  %v697_v2 = vmax.f32 %v661_v62, %v662_v63  ;;  %v577_v3 = vpop.f32.mrb[20].mxu0 }
 0x132   : > { %v627_v4 = vadd.f32 %v1539_v38, %v577_v3  ;;  %v579_v5 = vpop.f32.mrb[21].mxu0 }
 0x133   : > { %v695_v6 = vrot.slane %v694_v1, 1  ;;  %v698_v7 = vrot.slane %v697_v2, 4  ;;  %v580_v8 = vpop.f32.mrb[22].mxu0  ;;  %v775_v9 = vsel %vm774_vm5, %v766_v0, %v773_v50 }
 0x134   : > { %v643_v10 = vmax.f32 %v627_v4, 0.0  ;;  %v628_v11 = vadd.f32 %v1539_v38, %v580_v8  ;;  %v582_v12 = vpop.f32.mrb[23].mxu0 }
 0x135   : > { %v696_v13 = vmax.f32 %v694_v1, %v695_v6  ;;  %v699_v14 = vmax.f32 %v697_v2, %v698_v7 }
 0x136   : > { %v644_v15 = vmax.f32 %v628_v11, 0.0  ;;  %v663_v18 = vsel %vm1546_vm2, %v643_v10, 0.0 }
 0x137   : > { %v728_v16 = vpack.c.bf16 %v696_v13, %v696_v13  ;;  %v700_v17 = vrot.slane %v699_v14, 2 }
 0x138   : > { %v664_v19 = vsel %vm1550_vm3, %v644_v15, 0.0  ;;  %v1272_v15 = vld [vmem:[%s1692_s6] sm:$0xff]  }
 0x139   : > { %v767_v20 = vunpack.c.l.b16 %v728_v16  ;;  %v701_v21 = vmax.f32 %v699_v14, %v700_v17  ;;  %v704_v22 = vmax.f32 %v663_v18, %v664_v19  ;;  %v585_v23 = vpop.f32.mrb[24].mxu0  ;;  %v1273_v17 = vld [vmem:[%s1692_s6 + $0x8] sm:$0xff]   ;;  %v1274_v18 = vld [vmem:[%s1692_s6 + $0x10] sm:$0xff]   ;;  %v1275_v19 = vld [vmem:[%s1692_s6 + $0x18] sm:$0xff]  }
 0x13a   : > { %v629_v24 = vadd.f32 %v1539_v38, %v585_v23  ;;  %v587_v25 = vpop.f32.mrb[25].mxu0  ;;  %v1279_v23 = vld [vmem:[%s1692_s6 + $0x38] sm:$0xff]  }
 0x13b   : > { %v702_v26 = vrot.slane %v701_v21, 1  ;;  %v705_v27 = vrot.slane %v704_v22, 4  ;;  %v588_v29 = vpop.f32.mrb[26].mxu0  ;;  %v777_v30 = vsel %vm776_vm6, %v767_v20, %v775_v9  ;;  %v1276_v20 = vld [vmem:[%s1692_s6 + $0x20] sm:$0xff]  }
 0x13c   : > { %v645_v31 = vmax.f32 %v629_v24, 0.0  ;;  %v630_v32 = vadd.f32 %v1539_v38, %v588_v29  ;;  %v590_v33 = vpop.f32.mrb[27].mxu0  ;;  %v1107_v24 = vld [vmem:[%s1691_s5] ss:$0 sm:$0xff] }
 0x13d   : > { %v703_v34 = vmax.f32 %v701_v21, %v702_v26  ;;  %v706_v35 = vmax.f32 %v704_v22, %v705_v27  ;;  %v1277_v21 = vld [vmem:[%s1692_s6 + $0x28] sm:$0xff]   ;;  %v1278_v22 = vld [vmem:[%s1692_s6 + $0x30] sm:$0xff]  }
 0x13e   : > { %v646_v36 = vmax.f32 %v630_v32, 0.0  ;;  %v665_v40 = vsel %vm1546_vm2, %v645_v31, 0.0 }
 0x13f   : > { %v729_v37 = vpack.c.bf16 %v703_v34, %v703_v34  ;;  %v707_v39 = vrot.slane %v706_v35, 2 }
 0x140   : > { %v666_v41 = vsel %vm1550_vm3, %v646_v36, 0.0 }
 0x141   : > { %v768_v42 = vunpack.c.l.b16 %v729_v37  ;;  %v708_v43 = vmax.f32 %v706_v35, %v707_v39  ;;  %v711_v44 = vmax.f32 %v665_v40, %v666_v41  ;;  %v593_v45 = vpop.f32.mrb[28].mxu0 }
 0x142   : > { %v631_v46 = vadd.f32 %v1539_v38, %v593_v45  ;;  %v595_v47 = vpop.f32.mrb[29].mxu0 }
 0x143   : > { %v709_v50 = vrot.slane %v708_v43, 1  ;;  %v712_v51 = vrot.slane %v711_v44, 4  ;;  %v596_v52 = vpop.f32.mrb[30].mxu0  ;;  %v779_v53 = vsel %vm778_vm7, %v768_v42, %v777_v30 }
 0x144   : > { %v647_v54 = vmax.f32 %v631_v46, 0.0  ;;  %v632_v55 = vadd.f32 %v1539_v38, %v596_v52  ;;  %v598_v56 = vpop.f32.mrb[31].mxu0 }
 0x145   : > { %v710_v57 = vmax.f32 %v708_v43, %v709_v50  ;;  %v713_v58 = vmax.f32 %v711_v44, %v712_v51 }
 0x146   : > { %v648_v59 = vmax.f32 %v632_v55, 0.0  ;;  %v667_v62 = vsel %vm1546_vm2, %v647_v54, 0.0 }
 0x147   : > { %v730_v60 = vpack.c.bf16 %v710_v57, %v710_v57  ;;  %v714_v61 = vrot.slane %v713_v58, 2 }
 0x148   : > { %v668_v63 = vsel %vm1550_vm3, %v648_v59, 0.0 }
 0x149   : > { %v769_v0 = vunpack.c.l.b16 %v730_v60  ;;  %v715_v1 = vmax.f32 %v713_v58, %v714_v61  ;;  %v718_v2 = vmax.f32 %v667_v62, %v668_v63 }
 0x14b   : > { %v716_v3 = vrot.slane %v715_v1, 1  ;;  %v719_v4 = vrot.slane %v718_v2, 4  ;;  %v781_v5 = vsel %vm780_vm8, %v769_v0, %v779_v53 }
 0x14d   : > { %v717_v38 = vmax.f32 %v715_v1, %v716_v3  ;;  %v720_v6 = vmax.f32 %v718_v2, %v719_v4 }
 0x14f   : > { %v731_v7 = vpack.c.bf16 %v717_v38, %v717_v38  ;;  %v721_v8 = vrot.slane %v720_v6, 2 }
 0x151   : > { %v722_v9 = vmax.f32 %v720_v6, %v721_v8  ;;  %v770_v10 = vunpack.c.l.b16 %v731_v7 }
 0x153   : > { %v723_v11 = vrot.slane %v722_v9, 1  ;;  %v783_v48 = vsel %vm782_vm9, %v770_v10, %v781_v5 }
 0x155   : > { %v724_v12 = vmax.f32 %v722_v9, %v723_v11 }
 0x157   : > { %v732_v13 = vpack.c.bf16 %v724_v12, %v724_v12 }
 0x159   : > { %v771_v49 = vunpack.c.l.b16 %v732_v13 }
 0x15b   : > { %v785_v14 = vsel %vm784_vm10, %v771_v49, %v783_v48 }
 0x15c   : > { %v786_v16 = vpack.c.b16 %v785_v14, %v785_v14 }
 0x15e   : > { %1165 = vmatmul.mubr.bf16.vlgmr.msra.gmra.mrb[0].mxu1 %v786_v16 }
 0x15f   : > { %1169 = vmatpush3.bf16.msra.mxu1 %v1272_v15  ;;  %1184 = vmatprep.mubr.msk.bf16.mxu1 %vm1346_vm1, %v1345_v28 }
 0x160   : > { %1170 = vmatprep.subr.bf16.mxu1 %v1345_v28 }
 0x163   : > { %1171 = vmatpush3.bf16.msra.mxu1 %v1273_v17 }
 0x164   : > { %1172 = vmatprep.subr.bf16.mxu1 %v1345_v28 }
 0x167   : > { %1173 = vmatpush3.bf16.msra.mxu1 %v1274_v18 }
 0x168   : > { %1174 = vmatprep.subr.bf16.mxu1 %v1345_v28 }
 0x16b   : > { %1175 = vmatpush3.bf16.msra.mxu1 %v1275_v19 }
 0x16c   : > { %1176 = vmatprep.subr.bf16.mxu1 %v1345_v28 }
 0x16f   : > { %1177 = vmatpush3.bf16.msra.mxu1 %v1276_v20 }
 0x170   : > { %1178 = vmatprep.subr.bf16.mxu1 %v1345_v28 }
 0x173   : > { %1179 = vmatpush3.bf16.msra.mxu1 %v1277_v21 }
 0x174   : > { %1180 = vmatprep.subr.bf16.mxu1 %v1345_v28 }
 0x177   : > { %1181 = vmatpush3.bf16.msra.mxu1 %v1278_v22 }
 0x178   : > { %1182 = vmatprep.subr.bf16.mxu1 %v1345_v28  ;;  %v1116_v28 = vld [vmem:[%s1693_s7] ss:$0 sm:$0xff] }
 0x17b   : > { %1183 = vmatpush3.bf16.msra.mxu1 %v1279_v23 }
 0x231   : > { %v870_v25 = vpop.f32.mrb[0].mxu1 }
 0x232   : > { %v871_v26 = vadd.f32 %v1107_v24, %v870_v25  ;;  %v1166_v27 = vpop.f32.mrb[1].mxu1 }
 0x233   : > { %v873_v29 = vpop.f32.mrb[2].mxu1 }
 0x234   : > { %v876_v30 = vmax.f32 %v871_v26, 0.0  ;;  %v1167_v31 = vpop.f32.mrb[3].mxu1 }
 0x236   : > { %v877_v32 = vpack.c.bf16 %v876_v30, %v876_v30 }
 0x238   : > { %1185 = vmatmul.mubr.bf16.vlgmr.msra.gmra.mrb[4].mxu1 %v877_v32 }
 0x30b   : > { %v983_v33 = vpop.f32.mrb[4].mxu1 }
 0x30c   : > { %v984_v34 = vadd.f32 %v1116_v28, %v983_v33  ;;  %v1186_v35 = vpop.f32.mrb[5].mxu1 }
 0x30d   : > { %v986_v36 = vpop.f32.mrb[6].mxu1 }
 0x30e   : > { %989 = vst [vmem:[%s301_s21] sm:$0xff] %v984_v34  ;;  %v1187_v37 = vpop.f32.mrb[7].mxu1 }
 0x30f   : > { %1293 = shalt.err (!%p1290_p3)
}
 0x310   : > { %s1294_s13 = scalar_lea.hbm %s1644_s24, 128  ;;  %s1298_s20 = scalar_lea.hbm %s1694_s8, 256 }
 0x311   : > { %p1295_p4 = scmp.ne.s32.totalorder %s1644_s24, %s1294_s13  ;;  %p1299_p9 = scmp.lt.u32.totalorder %s1644_s24, %s1694_s8 }
 0x312   : > { %p1300_p10 = scmp.lt.u32.totalorder %s1298_s20, %s1294_s13  ;;  %p1302_p12 = scmp.lt.u32.totalorder %s1294_s13, %s1644_s24 }
 0x313   : > { %p1296_p7 = pnand %p1295_p4, %p1431_p5 }
 0x314   : > { %p1301_p11 = por %p1300_p10, %p1299_p9 }
 0x315   : > { %p1297_p8 = pneg %p1296_p7 }
 0x316   : > { %p1303_p13 = por %p1302_p12, %p1301_p11 }
 0x318   : > { %p1304_p0 = pnand %p1303_p13, %p1297_p8 }
 0x31a   : > { %1307 = shalt.err (!%p1304_p0)
}
 0x31b   : > { %1188 = dma.vmem_to_hbm [thread:$0]  (%p1431_p5), %s1646_s10, 128, %s1644_s24, %s991_s25  }
 0x31c PF: > { %p1194_p1 = scmp.ge.s32.totalorder %s1342_s30, 2  ;;  %s1016_s23 = sand.u32 1, %s1330_s27  }
 0x31d   : > { %s1017_s9 = scalar_lea.sflag [#allocation3], %s1016_s23 }
 0x31e   : > { %p1191_p2 = pnand %p1194_p1, %p1435_p6 }
 0x320   : > { %1325 = dma.done.wait (!%p1191_p2), %s1017_s9, 128  }
 0x321   : > { %1327 = vsyncadd (!%p1191_p2), %s1017_s9, 4294967168  ;;  %p18_p3 = scmp.ge.s32.totalorder %s1418_s11, 4   ;;  %s1701_s27 = smov %s1334_s28 }
 0x322   : > { %s1702_s28 = smov %s1338_s29  ;;  %s1703_s29 = smov %s1429_s14 }
 0x323   : > { %s1704_s30 = smov %s1418_s11  ;;  %20 = sbr.rel (!%p18_p3) target bundleno = 3 (0x3), region = 87 }
 0x32a   :  { %1022 = vsyncpa [#allocation3], 1 }
 0x32b   :  { %1024 = vsyncpa [#allocation3 + $0x1], 1 }

</bundles_post_ra>
